<compile_context>
chip_gen: v7x
topology: tpu7x:2x2x1
jax: 0.10.0
libtpu: 0.0.40
codegen_flags: <defaults>
</compile_context>

<pallas_src>
import functools

import jax
import jax.numpy as jnp
from jax import lax
from jax.experimental import pallas as pl
from jax.experimental.pallas import tpu as pltpu


# ----------------------------------------------------------------------------
# Kernel
# ----------------------------------------------------------------------------

def _sepconv_kernel(x_ref, w_ref, o_ref, patch_ref, *, k, stride, dilation,
                    tr, w_out, ci):
    """One (batch, co-tile, row-tile) grid step.

    x_ref:     (1, Hp, Ci, Wp)        full padded image for this batch element
    w_ref:     (co_tile, K*K*Ci)      folded depthwise*pointwise weights
    o_ref:     (1, co_tile, TR*Wout)  lane-dense output tile
    patch_ref: (K*K*Ci, TR*Wout)      VMEM im2col scratch
    """
    r_tile = pl.program_id(2)
    row_base = r_tile * (tr * stride)       # first padded input row of the tile

    # ---- build the im2col patch in VMEM (fully overwritten every step) -----
    for r in range(tr):                     # output rows in this tile
        for dy in range(k):
            row = row_base + r * stride + dy * dilation
            if stride == 1:
                # One contiguous (Ci, Wout + (k-1)*dil) row load, reused by all
                # k horizontal taps (value slices are cheap lane shifts).
                line = x_ref[0, row, :, 0:(k - 1) * dilation + w_out]
                for dx in range(k):
                    t = dy * k + dx
                    patch_ref[t * ci:(t + 1) * ci,
                              r * w_out:(r + 1) * w_out] = (
                        line[:, dx * dilation:dx * dilation + w_out])
            else:
                # Strided taps: stride handled here, not by wrapper subsampling.
                for dx in range(k):
                    t = dy * k + dx
                    patch_ref[t * ci:(t + 1) * ci,
                              r * w_out:(r + 1) * w_out] = (
                        x_ref[0, row, :,
                              pl.ds(dx * dilation, w_out, stride=stride)])

    # ---- one deep-contraction MXU dot, f32 accumulation ---------------------
    o_ref[0] = jnp.dot(w_ref[...], patch_ref[...],
                       preferred_element_type=jnp.float32).astype(o_ref.dtype)


# ----------------------------------------------------------------------------
# Wrapper
# ----------------------------------------------------------------------------

def _pick_row_tile(h_out, w_out):
    """Row tile TR: Hout % TR == 0, TR*Wout % 128 == 0, >=2 tiles, <=512 lanes."""
    cands = [t for t in range(1, h_out)
             if h_out % t == 0 and (t * w_out) % 128 == 0]
    if not cands:
        return h_out          # single tile; block last dim == full array dim
    best = None
    for t in cands:           # ascending -> largest tile with <=512 lanes wins
        if t * w_out <= 512:
            best = t
    return best if best is not None else cands[0]


def _pick_co_tile(co):
    for t in (256, 128, 64):  # multiples of 8 -> sublane-aligned blocks
        if co > t and co % t == 0:
            return t
    return co                 # small Co: single Co-exact tile


def separable_conv2d(x, dw_w, pw_w, *, kernel_size=3, stride=1, padding=1,
                     dilation=1, compute_dtype=jnp.bfloat16):
    """SeparableConv2d.forward.

    x:    (B, Ci, H, W)   NCHW (PyTorch layout)
    dw_w: (Ci, 1, K, K)   depthwise weight (groups=Ci, bias=False)
    pw_w: (Co, Ci, 1, 1)  pointwise weight (bias=False)
    returns (B, Co, Hout, Wout) NCHW, float32
    """
    B, Ci, H, W = x.shape
    k, s, p, d = kernel_size, stride, padding, dilation
    Co = pw_w.shape[0]

    H_out = (H + 2 * p - d * (k - 1) - 1) // s + 1
    W_out = (W + 2 * p - d * (k - 1) - 1) // s + 1

    # ---- fold depthwise into pointwise (trace-time, tiny) -------------------
    dw2 = dw_w[:, 0, :, :].astype(jnp.float32)             # (Ci, K, K)
    pw2 = pw_w[:, :, 0, 0].astype(jnp.float32)             # (Co, Ci)
    w_fold = jnp.einsum('oc,cyx->oyxc', pw2, dw2)           # (Co, K, K, Ci)
    w_fold = w_fold.reshape(Co, k * k * Ci).astype(compute_dtype)

    # ---- padded input in (B, Hp, Ci, Wp) layout (single fused HBM pass) -----
    Hp, Wp = H + 2 * p, W + 2 * p
    xp = jnp.transpose(jnp.pad(x, ((0, 0), (0, 0), (p, p), (p, p))),
                       (0, 2, 1, 3)).astype(compute_dtype)  # (B, Hp, Ci, Wp)

    # ---- tiling --------------------------------------------------------------
    TR = _pick_row_tile(H_out, W_out)
    n_row = H_out // TR
    CO_T = _pick_co_tile(Co)
    n_co = Co // CO_T

    # Explicit scoped-VMEM budget: double-buffered blocks + scratch, clamped to
    # a range that is safe on v5e/v6e (128 MiB) and v7x (64 MiB).
    bpe = jnp.dtype(compute_dtype).itemsize
    est = (2 * Hp * Ci * Wp * bpe              # input block (per batch)
           + 2 * CO_T * k * k * Ci * bpe       # folded-weight block
           + 2 * CO_T * TR * W_out * 4         # f32 output block
           + k * k * Ci * TR * W_out * bpe)    # im2col scratch
    vmem_limit = int(min(max(2 * est, 16 << 20), 32 << 20))

    kernel = functools.partial(_sepconv_kernel, k=k, stride=s, dilation=d,
                               tr=TR, w_out=W_out, ci=Ci)

    out_flat = pl.pallas_call(
        kernel,
        out_shape=jax.ShapeDtypeStruct((B, Co, H_out * W_out), jnp.float32),
        grid=(B, n_co, n_row),
        in_specs=[
            # Full padded image per batch; re-DMA'd only when b changes.
            pl.BlockSpec((1, Hp, Ci, Wp), lambda b, c, r: (b, 0, 0, 0)),
            # Folded weight; re-DMA'd only when the co-tile changes.
            pl.BlockSpec((CO_T, k * k * Ci), lambda b, c, r: (c, 0)),
        ],
        out_specs=pl.BlockSpec((1, CO_T, TR * W_out), lambda b, c, r: (b, c, r)),
        scratch_shapes=[pltpu.VMEM((k * k * Ci, TR * W_out), compute_dtype)],
        compiler_params=pltpu.CompilerParams(
            dimension_semantics=("parallel", "parallel", "parallel"),
            vmem_limit_bytes=vmem_limit),
    )(xp, w_fold)

    # Free metadata reshape back to NCHW; no slicing needed (output is Co- and
    # Wout-exact straight out of the kernel).
    return out_flat.reshape(B, Co, H_out, W_out)


# ----------------------------------------------------------------------------
# Pure-JAX reference (two lax convolutions) for correctness checking
# ----------------------------------------------------------------------------

def separable_conv2d_reference(x, dw_w, pw_w, *, kernel_size=3, stride=1,
                               padding=1, dilation=1):
    Ci = x.shape[1]
    y = lax.conv_general_dilated(
        x, dw_w, window_strides=(stride, stride),
        padding=((padding, padding), (padding, padding)),
        rhs_dilation=(dilation, dilation),
        dimension_numbers=('NCHW', 'OIHW', 'NCHW'),
        feature_group_count=Ci)
    z = lax.conv_general_dilated(
        y, pw_w, window_strides=(1, 1), padding=((0, 0), (0, 0)),
        dimension_numbers=('NCHW', 'OIHW', 'NCHW'))
    return z


# ----------------------------------------------------------------------------

if __name__ == "__main__":
    # Small shapes: B=2, in_channels=4, out_channels=8, 16x16 spatial,
    # kernel_size=3, stride=1, padding=1, dilation=1, bias=False.
    B, CIN, COUT, H, W = 2, 4, 8, 16, 16
    K, STRIDE, PAD, DIL = 3, 1, 1, 1

    key = jax.random.PRNGKey(0)
    kx, kd, kp = jax.random.split(key, 3)
    x = jax.random.normal(kx, (B, CIN, H, W), dtype=jnp.float32)
    dw_w = 0.2 * jax.random.normal(kd, (CIN, 1, K, K), dtype=jnp.float32)
    pw_w = 0.2 * jax.random.normal(kp, (COUT, CIN, 1, 1), dtype=jnp.float32)

    ref = separable_conv2d_reference(x, dw_w, pw_w, kernel_size=K,
                                     stride=STRIDE, padding=PAD, dilation=DIL)

    # f32-operand path: tight check of the fold + in-kernel indexing.
    fwd_f32 = jax.jit(functools.partial(
        separable_conv2d, kernel_size=K, stride=STRIDE, padding=PAD,
        dilation=DIL, compute_dtype=jnp.float32))
    out_f32 = fwd_f32(x, dw_w, pw_w)
    jax.block_until_ready(out_f32)
    assert out_f32.shape == (B, COUT, H, W), out_f32.shape
    assert bool(jnp.all(jnp.isfinite(out_f32)))
    assert bool(jnp.allclose(out_f32, ref, rtol=1e-4, atol=1e-4)), float(
        jnp.max(jnp.abs(out_f32 - ref)))

    # bf16-operand path (performance default): f32 accumulation, bf16 contract.
    fwd_bf16 = jax.jit(functools.partial(
        separable_conv2d, kernel_size=K, stride=STRIDE, padding=PAD,
        dilation=DIL, compute_dtype=jnp.bfloat16))
    out_bf16 = fwd_bf16(x, dw_w, pw_w)
    jax.block_until_ready(out_bf16)
    assert out_bf16.shape == (B, COUT, H, W), out_bf16.shape
    assert bool(jnp.all(jnp.isfinite(out_bf16)))
    assert bool(jnp.allclose(out_bf16, ref, rtol=5e-2, atol=5e-2)), float(
        jnp.max(jnp.abs(out_bf16 - ref)))

    print("KERNEL_OK")
</pallas_src>

<mosaic_0001>
module attributes {stable_mosaic.version = 11 : i64} {
  func.func @_sepconv_kernel(%arg0: i32, %arg1: i32, %arg2: i32, %arg3: memref<1x18x4x18xf32, #tpu.memory_space<vmem>>, %arg4: memref<8x36xf32, #tpu.memory_space<vmem>>, %arg5: memref<1x8x128xf32, #tpu.memory_space<vmem>>, %arg6: memref<36x128xf32, #tpu.memory_space<vmem>>) attributes {dimension_semantics = [#tpu.dimension_semantics<parallel>, #tpu.dimension_semantics<parallel>, #tpu.dimension_semantics<parallel>], iteration_bounds = array<i64: 2, 1, 2>, scalar_prefetch = 0 : i64, scratch_operands = 1 : i64, tpu.core_type = #tpu.core_type<tc>, window_params = [{transform_indices = @transform_0, window_bounds = array<i64: 1, 18, 4, 18>}, {transform_indices = @transform_1, window_bounds = array<i64: 8, 36>}, {transform_indices = @transform_2, window_bounds = array<i64: 1, 8, 128>}]} {
    %c8_i32 = arith.constant 8 : i32
    %0 = arith.muli %arg2, %c8_i32 : i32
    %c0_i32 = arith.constant 0 : i32
    %1 = arith.addi %0, %c0_i32 : i32
    %c0_i32_0 = arith.constant 0 : i32
    %2 = arith.addi %1, %c0_i32_0 : i32
    %c0 = arith.constant 0 : index
    %3 = arith.index_cast %2 : i32 to index
    %c0_1 = arith.constant 0 : index
    %c0_2 = arith.constant 0 : index
    %4 = vector.load %arg3[%c0, %3, %c0_1, %c0_2] : memref<1x18x4x18xf32, #tpu.memory_space<vmem>>, vector<1x1x4x18xf32>
    %5 = vector.shape_cast %4 : vector<1x1x4x18xf32> to vector<4x18xf32>
    %6 = vector.extract_strided_slice %5 {offsets = [0, 0], sizes = [4, 16], strides = [1, 1]} : vector<4x18xf32> to vector<4x16xf32>
    %c0_3 = arith.constant 0 : index
    %c0_4 = arith.constant 0 : index
    %7 = vector.load %arg6[%c0_3, %c0_4] : memref<36x128xf32, #tpu.memory_space<vmem>>, vector<4x16xf32>
    tpu.vector_store %arg6[%c0_3, %c0_4], %6 {strides = array<i32>} : memref<36x128xf32, #tpu.memory_space<vmem>>, vector<4x16xf32>,
    %8 = vector.extract_strided_slice %5 {offsets = [0, 1], sizes = [4, 16], strides = [1, 1]} : vector<4x18xf32> to vector<4x16xf32>
    %c4 = arith.constant 4 : index
    %c0_5 = arith.constant 0 : index
    %9 = vector.load %arg6[%c4, %c0_5] : memref<36x128xf32, #tpu.memory_space<vmem>>, vector<4x16xf32>
    tpu.vector_store %arg6[%c4, %c0_5], %8 {strides = array<i32>} : memref<36x128xf32, #tpu.memory_space<vmem>>, vector<4x16xf32>,
    %10 = vector.extract_strided_slice %5 {offsets = [0, 2], sizes = [4, 16], strides = [1, 1]} : vector<4x18xf32> to vector<4x16xf32>
    %c8 = arith.constant 8 : index
    %c0_6 = arith.constant 0 : index
    %11 = vector.load %arg6[%c8, %c0_6] : memref<36x128xf32, #tpu.memory_space<vmem>>, vector<4x16xf32>
    tpu.vector_store %arg6[%c8, %c0_6], %10 {strides = array<i32>} : memref<36x128xf32, #tpu.memory_space<vmem>>, vector<4x16xf32>,
    %c0_i32_7 = arith.constant 0 : i32
    %12 = arith.addi %0, %c0_i32_7 : i32
    %c1_i32 = arith.constant 1 : i32
    %13 = arith.addi %12, %c1_i32 : i32
    %c0_8 = arith.constant 0 : index
    %14 = arith.index_cast %13 : i32 to index
    %c0_9 = arith.constant 0 : index
    %c0_10 = arith.constant 0 : index
    %15 = vector.load %arg3[%c0_8, %14, %c0_9, %c0_10] : memref<1x18x4x18xf32, #tpu.memory_space<vmem>>, vector<1x1x4x18xf32>
    %16 = vector.shape_cast %15 : vector<1x1x4x18xf32> to vector<4x18xf32>
    %17 = vector.extract_strided_slice %16 {offsets = [0, 0], sizes = [4, 16], strides = [1, 1]} : vector<4x18xf32> to vector<4x16xf32>
    %c12 = arith.constant 12 : index
    %c0_11 = arith.constant 0 : index
    %18 = vector.load %arg6[%c12, %c0_11] : memref<36x128xf32, #tpu.memory_space<vmem>>, vector<4x16xf32>
    tpu.vector_store %arg6[%c12, %c0_11], %17 {strides = array<i32>} : memref<36x128xf32, #tpu.memory_space<vmem>>, vector<4x16xf32>,
    %19 = vector.extract_strided_slice %16 {offsets = [0, 1], sizes = [4, 16], strides = [1, 1]} : vector<4x18xf32> to vector<4x16xf32>
    %c16 = arith.constant 16 : index
    %c0_12 = arith.constant 0 : index
    %20 = vector.load %arg6[%c16, %c0_12] : memref<36x128xf32, #tpu.memory_space<vmem>>, vector<4x16xf32>
    tpu.vector_store %arg6[%c16, %c0_12], %19 {strides = array<i32>} : memref<36x128xf32, #tpu.memory_space<vmem>>, vector<4x16xf32>,
    %21 = vector.extract_strided_slice %16 {offsets = [0, 2], sizes = [4, 16], strides = [1, 1]} : vector<4x18xf32> to vector<4x16xf32>
    %c20 = arith.constant 20 : index
    %c0_13 = arith.constant 0 : index
    %22 = vector.load %arg6[%c20, %c0_13] : memref<36x128xf32, #tpu.memory_space<vmem>>, vector<4x16xf32>
    tpu.vector_store %arg6[%c20, %c0_13], %21 {strides = array<i32>} : memref<36x128xf32, #tpu.memory_space<vmem>>, vector<4x16xf32>,
    %c0_i32_14 = arith.constant 0 : i32
    %23 = arith.addi %0, %c0_i32_14 : i32
    %c2_i32 = arith.constant 2 : i32
    %24 = arith.addi %23, %c2_i32 : i32
    %c0_15 = arith.constant 0 : index
    %25 = arith.index_cast %24 : i32 to index
    %c0_16 = arith.constant 0 : index
    %c0_17 = arith.constant 0 : index
    %26 = vector.load %arg3[%c0_15, %25, %c0_16, %c0_17] : memref<1x18x4x18xf32, #tpu.memory_space<vmem>>, vector<1x1x4x18xf32>
    %27 = vector.shape_cast %26 : vector<1x1x4x18xf32> to vector<4x18xf32>
    %28 = vector.extract_strided_slice %27 {offsets = [0, 0], sizes = [4, 16], strides = [1, 1]} : vector<4x18xf32> to vector<4x16xf32>
    %c24 = arith.constant 24 : index
    %c0_18 = arith.constant 0 : index
    %29 = vector.load %arg6[%c24, %c0_18] : memref<36x128xf32, #tpu.memory_space<vmem>>, vector<4x16xf32>
    tpu.vector_store %arg6[%c24, %c0_18], %28 {strides = array<i32>} : memref<36x128xf32, #tpu.memory_space<vmem>>, vector<4x16xf32>,
    %30 = vector.extract_strided_slice %27 {offsets = [0, 1], sizes = [4, 16], strides = [1, 1]} : vector<4x18xf32> to vector<4x16xf32>
    %c28 = arith.constant 28 : index
    %c0_19 = arith.constant 0 : index
    %31 = vector.load %arg6[%c28, %c0_19] : memref<36x128xf32, #tpu.memory_space<vmem>>, vector<4x16xf32>
    tpu.vector_store %arg6[%c28, %c0_19], %30 {strides = array<i32>} : memref<36x128xf32, #tpu.memory_space<vmem>>, vector<4x16xf32>,
    %32 = vector.extract_strided_slice %27 {offsets = [0, 2], sizes = [4, 16], strides = [1, 1]} : vector<4x18xf32> to vector<4x16xf32>
    %c32 = arith.constant 32 : index
    %c0_20 = arith.constant 0 : index
    %33 = vector.load %arg6[%c32, %c0_20] : memref<36x128xf32, #tpu.memory_space<vmem>>, vector<4x16xf32>
    tpu.vector_store %arg6[%c32, %c0_20], %32 {strides = array<i32>} : memref<36x128xf32, #tpu.memory_space<vmem>>, vector<4x16xf32>,
    %c1_i32_21 = arith.constant 1 : i32
    %34 = arith.addi %0, %c1_i32_21 : i32
    %c0_i32_22 = arith.constant 0 : i32
    %35 = arith.addi %34, %c0_i32_22 : i32
    %c0_23 = arith.constant 0 : index
    %36 = arith.index_cast %35 : i32 to index
    %c0_24 = arith.constant 0 : index
    %c0_25 = arith.constant 0 : index
    %37 = vector.load %arg3[%c0_23, %36, %c0_24, %c0_25] : memref<1x18x4x18xf32, #tpu.memory_space<vmem>>, vector<1x1x4x18xf32>
    %38 = vector.shape_cast %37 : vector<1x1x4x18xf32> to vector<4x18xf32>
    %39 = vector.extract_strided_slice %38 {offsets = [0, 0], sizes = [4, 16], strides = [1, 1]} : vector<4x18xf32> to vector<4x16xf32>
    %c0_26 = arith.constant 0 : index
    %c16_27 = arith.constant 16 : index
    %40 = vector.load %arg6[%c0_26, %c16_27] : memref<36x128xf32, #tpu.memory_space<vmem>>, vector<4x16xf32>
    tpu.vector_store %arg6[%c0_26, %c16_27], %39 {strides = array<i32>} : memref<36x128xf32, #tpu.memory_space<vmem>>, vector<4x16xf32>,
    %41 = vector.extract_strided_slice %38 {offsets = [0, 1], sizes = [4, 16], strides = [1, 1]} : vector<4x18xf32> to vector<4x16xf32>
    %c4_28 = arith.constant 4 : index
    %c16_29 = arith.constant 16 : index
    %42 = vector.load %arg6[%c4_28, %c16_29] : memref<36x128xf32, #tpu.memory_space<vmem>>, vector<4x16xf32>
    tpu.vector_store %arg6[%c4_28, %c16_29], %41 {strides = array<i32>} : memref<36x128xf32, #tpu.memory_space<vmem>>, vector<4x16xf32>,
    %43 = vector.extract_strided_slice %38 {offsets = [0, 2], sizes = [4, 16], strides = [1, 1]} : vector<4x18xf32> to vector<4x16xf32>
    %c8_30 = arith.constant 8 : index
    %c16_31 = arith.constant 16 : index
    %44 = vector.load %arg6[%c8_30, %c16_31] : memref<36x128xf32, #tpu.memory_space<vmem>>, vector<4x16xf32>
    tpu.vector_store %arg6[%c8_30, %c16_31], %43 {strides = array<i32>} : memref<36x128xf32, #tpu.memory_space<vmem>>, vector<4x16xf32>,
    %c1_i32_32 = arith.constant 1 : i32
    %45 = arith.addi %0, %c1_i32_32 : i32
    %c1_i32_33 = arith.constant 1 : i32
    %46 = arith.addi %45, %c1_i32_33 : i32
    %c0_34 = arith.constant 0 : index
    %47 = arith.index_cast %46 : i32 to index
    %c0_35 = arith.constant 0 : index
    %c0_36 = arith.constant 0 : index
    %48 = vector.load %arg3[%c0_34, %47, %c0_35, %c0_36] : memref<1x18x4x18xf32, #tpu.memory_space<vmem>>, vector<1x1x4x18xf32>
    %49 = vector.shape_cast %48 : vector<1x1x4x18xf32> to vector<4x18xf32>
    %50 = vector.extract_strided_slice %49 {offsets = [0, 0], sizes = [4, 16], strides = [1, 1]} : vector<4x18xf32> to vector<4x16xf32>
    %c12_37 = arith.constant 12 : index
    %c16_38 = arith.constant 16 : index
    %51 = vector.load %arg6[%c12_37, %c16_38] : memref<36x128xf32, #tpu.memory_space<vmem>>, vector<4x16xf32>
    tpu.vector_store %arg6[%c12_37, %c16_38], %50 {strides = array<i32>} : memref<36x128xf32, #tpu.memory_space<vmem>>, vector<4x16xf32>,
    %52 = vector.extract_strided_slice %49 {offsets = [0, 1], sizes = [4, 16], strides = [1, 1]} : vector<4x18xf32> to vector<4x16xf32>
    %c16_39 = arith.constant 16 : index
    %c16_40 = arith.constant 16 : index
    %53 = vector.load %arg6[%c16_39, %c16_40] : memref<36x128xf32, #tpu.memory_space<vmem>>, vector<4x16xf32>
    tpu.vector_store %arg6[%c16_39, %c16_40], %52 {strides = array<i32>} : memref<36x128xf32, #tpu.memory_space<vmem>>, vector<4x16xf32>,
    %54 = vector.extract_strided_slice %49 {offsets = [0, 2], sizes = [4, 16], strides = [1, 1]} : vector<4x18xf32> to vector<4x16xf32>
    %c20_41 = arith.constant 20 : index
    %c16_42 = arith.constant 16 : index
    %55 = vector.load %arg6[%c20_41, %c16_42] : memref<36x128xf32, #tpu.memory_space<vmem>>, vector<4x16xf32>
    tpu.vector_store %arg6[%c20_41, %c16_42], %54 {strides = array<i32>} : memref<36x128xf32, #tpu.memory_space<vmem>>, vector<4x16xf32>,
    %c1_i32_43 = arith.constant 1 : i32
    %56 = arith.addi %0, %c1_i32_43 : i32
    %c2_i32_44 = arith.constant 2 : i32
    %57 = arith.addi %56, %c2_i32_44 : i32
    %c0_45 = arith.constant 0 : index
    %58 = arith.index_cast %57 : i32 to index
    %c0_46 = arith.constant 0 : index
    %c0_47 = arith.constant 0 : index
    %59 = vector.load %arg3[%c0_45, %58, %c0_46, %c0_47] : memref<1x18x4x18xf32, #tpu.memory_space<vmem>>, vector<1x1x4x18xf32>
    %60 = vector.shape_cast %59 : vector<1x1x4x18xf32> to vector<4x18xf32>
    %61 = vector.extract_strided_slice %60 {offsets = [0, 0], sizes = [4, 16], strides = [1, 1]} : vector<4x18xf32> to vector<4x16xf32>
    %c24_48 = arith.constant 24 : index
    %c16_49 = arith.constant 16 : index
    %62 = vector.load %arg6[%c24_48, %c16_49] : memref<36x128xf32, #tpu.memory_space<vmem>>, vector<4x16xf32>
    tpu.vector_store %arg6[%c24_48, %c16_49], %61 {strides = array<i32>} : memref<36x128xf32, #tpu.memory_space<vmem>>, vector<4x16xf32>,
    %63 = vector.extract_strided_slice %60 {offsets = [0, 1], sizes = [4, 16], strides = [1, 1]} : vector<4x18xf32> to vector<4x16xf32>
    %c28_50 = arith.constant 28 : index
    %c16_51 = arith.constant 16 : index
    %64 = vector.load %arg6[%c28_50, %c16_51] : memref<36x128xf32, #tpu.memory_space<vmem>>, vector<4x16xf32>
    tpu.vector_store %arg6[%c28_50, %c16_51], %63 {strides = array<i32>} : memref<36x128xf32, #tpu.memory_space<vmem>>, vector<4x16xf32>,
    %65 = vector.extract_strided_slice %60 {offsets = [0, 2], sizes = [4, 16], strides = [1, 1]} : vector<4x18xf32> to vector<4x16xf32>
    %c32_52 = arith.constant 32 : index
    %c16_53 = arith.constant 16 : index
    %66 = vector.load %arg6[%c32_52, %c16_53] : memref<36x128xf32, #tpu.memory_space<vmem>>, vector<4x16xf32>
    tpu.vector_store %arg6[%c32_52, %c16_53], %65 {strides = array<i32>} : memref<36x128xf32, #tpu.memory_space<vmem>>, vector<4x16xf32>,
    %c2_i32_54 = arith.constant 2 : i32
    %67 = arith.addi %0, %c2_i32_54 : i32
    %c0_i32_55 = arith.constant 0 : i32
    %68 = arith.addi %67, %c0_i32_55 : i32
    %c0_56 = arith.constant 0 : index
    %69 = arith.index_cast %68 : i32 to index
    %c0_57 = arith.constant 0 : index
    %c0_58 = arith.constant 0 : index
    %70 = vector.load %arg3[%c0_56, %69, %c0_57, %c0_58] : memref<1x18x4x18xf32, #tpu.memory_space<vmem>>, vector<1x1x4x18xf32>
    %71 = vector.shape_cast %70 : vector<1x1x4x18xf32> to vector<4x18xf32>
    %72 = vector.extract_strided_slice %71 {offsets = [0, 0], sizes = [4, 16], strides = [1, 1]} : vector<4x18xf32> to vector<4x16xf32>
    %c0_59 = arith.constant 0 : index
    %c32_60 = arith.constant 32 : index
    %73 = vector.load %arg6[%c0_59, %c32_60] : memref<36x128xf32, #tpu.memory_space<vmem>>, vector<4x16xf32>
    tpu.vector_store %arg6[%c0_59, %c32_60], %72 {strides = array<i32>} : memref<36x128xf32, #tpu.memory_space<vmem>>, vector<4x16xf32>,
    %74 = vector.extract_strided_slice %71 {offsets = [0, 1], sizes = [4, 16], strides = [1, 1]} : vector<4x18xf32> to vector<4x16xf32>
    %c4_61 = arith.constant 4 : index
    %c32_62 = arith.constant 32 : index
    %75 = vector.load %arg6[%c4_61, %c32_62] : memref<36x128xf32, #tpu.memory_space<vmem>>, vector<4x16xf32>
    tpu.vector_store %arg6[%c4_61, %c32_62], %74 {strides = array<i32>} : memref<36x128xf32, #tpu.memory_space<vmem>>, vector<4x16xf32>,
    %76 = vector.extract_strided_slice %71 {offsets = [0, 2], sizes = [4, 16], strides = [1, 1]} : vector<4x18xf32> to vector<4x16xf32>
    %c8_63 = arith.constant 8 : index
    %c32_64 = arith.constant 32 : index
    %77 = vector.load %arg6[%c8_63, %c32_64] : memref<36x128xf32, #tpu.memory_space<vmem>>, vector<4x16xf32>
    tpu.vector_store %arg6[%c8_63, %c32_64], %76 {strides = array<i32>} : memref<36x128xf32, #tpu.memory_space<vmem>>, vector<4x16xf32>,
    %c2_i32_65 = arith.constant 2 : i32
    %78 = arith.addi %0, %c2_i32_65 : i32
    %c1_i32_66 = arith.constant 1 : i32
    %79 = arith.addi %78, %c1_i32_66 : i32
    %c0_67 = arith.constant 0 : index
    %80 = arith.index_cast %79 : i32 to index
    %c0_68 = arith.constant 0 : index
    %c0_69 = arith.constant 0 : index
    %81 = vector.load %arg3[%c0_67, %80, %c0_68, %c0_69] : memref<1x18x4x18xf32, #tpu.memory_space<vmem>>, vector<1x1x4x18xf32>
    %82 = vector.shape_cast %81 : vector<1x1x4x18xf32> to vector<4x18xf32>
    %83 = vector.extract_strided_slice %82 {offsets = [0, 0], sizes = [4, 16], strides = [1, 1]} : vector<4x18xf32> to vector<4x16xf32>
    %c12_70 = arith.constant 12 : index
    %c32_71 = arith.constant 32 : index
    %84 = vector.load %arg6[%c12_70, %c32_71] : memref<36x128xf32, #tpu.memory_space<vmem>>, vector<4x16xf32>
    tpu.vector_store %arg6[%c12_70, %c32_71], %83 {strides = array<i32>} : memref<36x128xf32, #tpu.memory_space<vmem>>, vector<4x16xf32>,
    %85 = vector.extract_strided_slice %82 {offsets = [0, 1], sizes = [4, 16], strides = [1, 1]} : vector<4x18xf32> to vector<4x16xf32>
    %c16_72 = arith.constant 16 : index
    %c32_73 = arith.constant 32 : index
    %86 = vector.load %arg6[%c16_72, %c32_73] : memref<36x128xf32, #tpu.memory_space<vmem>>, vector<4x16xf32>
    tpu.vector_store %arg6[%c16_72, %c32_73], %85 {strides = array<i32>} : memref<36x128xf32, #tpu.memory_space<vmem>>, vector<4x16xf32>,
    %87 = vector.extract_strided_slice %82 {offsets = [0, 2], sizes = [4, 16], strides = [1, 1]} : vector<4x18xf32> to vector<4x16xf32>
    %c20_74 = arith.constant 20 : index
    %c32_75 = arith.constant 32 : index
    %88 = vector.load %arg6[%c20_74, %c32_75] : memref<36x128xf32, #tpu.memory_space<vmem>>, vector<4x16xf32>
    tpu.vector_store %arg6[%c20_74, %c32_75], %87 {strides = array<i32>} : memref<36x128xf32, #tpu.memory_space<vmem>>, vector<4x16xf32>,
    %c2_i32_76 = arith.constant 2 : i32
    %89 = arith.addi %0, %c2_i32_76 : i32
    %c2_i32_77 = arith.constant 2 : i32
    %90 = arith.addi %89, %c2_i32_77 : i32
    %c0_78 = arith.constant 0 : index
    %91 = arith.index_cast %90 : i32 to index
    %c0_79 = arith.constant 0 : index
    %c0_80 = arith.constant 0 : index
    %92 = vector.load %arg3[%c0_78, %91, %c0_79, %c0_80] : memref<1x18x4x18xf32, #tpu.memory_space<vmem>>, vector<1x1x4x18xf32>
    %93 = vector.shape_cast %92 : vector<1x1x4x18xf32> to vector<4x18xf32>
    %94 = vector.extract_strided_slice %93 {offsets = [0, 0], sizes = [4, 16], strides = [1, 1]} : vector<4x18xf32> to vector<4x16xf32>
    %c24_81 = arith.constant 24 : index
    %c32_82 = arith.constant 32 : index
    %95 = vector.load %arg6[%c24_81, %c32_82] : memref<36x128xf32, #tpu.memory_space<vmem>>, vector<4x16xf32>
    tpu.vector_store %arg6[%c24_81, %c32_82], %94 {strides = array<i32>} : memref<36x128xf32, #tpu.memory_space<vmem>>, vector<4x16xf32>,
    %96 = vector.extract_strided_slice %93 {offsets = [0, 1], sizes = [4, 16], strides = [1, 1]} : vector<4x18xf32> to vector<4x16xf32>
    %c28_83 = arith.constant 28 : index
    %c32_84 = arith.constant 32 : index
    %97 = vector.load %arg6[%c28_83, %c32_84] : memref<36x128xf32, #tpu.memory_space<vmem>>, vector<4x16xf32>
    tpu.vector_store %arg6[%c28_83, %c32_84], %96 {strides = array<i32>} : memref<36x128xf32, #tpu.memory_space<vmem>>, vector<4x16xf32>,
    %98 = vector.extract_strided_slice %93 {offsets = [0, 2], sizes = [4, 16], strides = [1, 1]} : vector<4x18xf32> to vector<4x16xf32>
    %c32_85 = arith.constant 32 : index
    %c32_86 = arith.constant 32 : index
    %99 = vector.load %arg6[%c32_85, %c32_86] : memref<36x128xf32, #tpu.memory_space<vmem>>, vector<4x16xf32>
    tpu.vector_store %arg6[%c32_85, %c32_86], %98 {strides = array<i32>} : memref<36x128xf32, #tpu.memory_space<vmem>>, vector<4x16xf32>,
    %c3_i32 = arith.constant 3 : i32
    %100 = arith.addi %0, %c3_i32 : i32
    %c0_i32_87 = arith.constant 0 : i32
    %101 = arith.addi %100, %c0_i32_87 : i32
    %c0_88 = arith.constant 0 : index
    %102 = arith.index_cast %101 : i32 to index
    %c0_89 = arith.constant 0 : index
    %c0_90 = arith.constant 0 : index
    %103 = vector.load %arg3[%c0_88, %102, %c0_89, %c0_90] : memref<1x18x4x18xf32, #tpu.memory_space<vmem>>, vector<1x1x4x18xf32>
    %104 = vector.shape_cast %103 : vector<1x1x4x18xf32> to vector<4x18xf32>
    %105 = vector.extract_strided_slice %104 {offsets = [0, 0], sizes = [4, 16], strides = [1, 1]} : vector<4x18xf32> to vector<4x16xf32>
    %c0_91 = arith.constant 0 : index
    %c48 = arith.constant 48 : index
    %106 = vector.load %arg6[%c0_91, %c48] : memref<36x128xf32, #tpu.memory_space<vmem>>, vector<4x16xf32>
    tpu.vector_store %arg6[%c0_91, %c48], %105 {strides = array<i32>} : memref<36x128xf32, #tpu.memory_space<vmem>>, vector<4x16xf32>,
    %107 = vector.extract_strided_slice %104 {offsets = [0, 1], sizes = [4, 16], strides = [1, 1]} : vector<4x18xf32> to vector<4x16xf32>
    %c4_92 = arith.constant 4 : index
    %c48_93 = arith.constant 48 : index
    %108 = vector.load %arg6[%c4_92, %c48_93] : memref<36x128xf32, #tpu.memory_space<vmem>>, vector<4x16xf32>
    tpu.vector_store %arg6[%c4_92, %c48_93], %107 {strides = array<i32>} : memref<36x128xf32, #tpu.memory_space<vmem>>, vector<4x16xf32>,
    %109 = vector.extract_strided_slice %104 {offsets = [0, 2], sizes = [4, 16], strides = [1, 1]} : vector<4x18xf32> to vector<4x16xf32>
    %c8_94 = arith.constant 8 : index
    %c48_95 = arith.constant 48 : index
    %110 = vector.load %arg6[%c8_94, %c48_95] : memref<36x128xf32, #tpu.memory_space<vmem>>, vector<4x16xf32>
    tpu.vector_store %arg6[%c8_94, %c48_95], %109 {strides = array<i32>} : memref<36x128xf32, #tpu.memory_space<vmem>>, vector<4x16xf32>,
    %c3_i32_96 = arith.constant 3 : i32
    %111 = arith.addi %0, %c3_i32_96 : i32
    %c1_i32_97 = arith.constant 1 : i32
    %112 = arith.addi %111, %c1_i32_97 : i32
    %c0_98 = arith.constant 0 : index
    %113 = arith.index_cast %112 : i32 to index
    %c0_99 = arith.constant 0 : index
    %c0_100 = arith.constant 0 : index
    %114 = vector.load %arg3[%c0_98, %113, %c0_99, %c0_100] : memref<1x18x4x18xf32, #tpu.memory_space<vmem>>, vector<1x1x4x18xf32>
    %115 = vector.shape_cast %114 : vector<1x1x4x18xf32> to vector<4x18xf32>
    %116 = vector.extract_strided_slice %115 {offsets = [0, 0], sizes = [4, 16], strides = [1, 1]} : vector<4x18xf32> to vector<4x16xf32>
    %c12_101 = arith.constant 12 : index
    %c48_102 = arith.constant 48 : index
    %117 = vector.load %arg6[%c12_101, %c48_102] : memref<36x128xf32, #tpu.memory_space<vmem>>, vector<4x16xf32>
    tpu.vector_store %arg6[%c12_101, %c48_102], %116 {strides = array<i32>} : memref<36x128xf32, #tpu.memory_space<vmem>>, vector<4x16xf32>,
    %118 = vector.extract_strided_slice %115 {offsets = [0, 1], sizes = [4, 16], strides = [1, 1]} : vector<4x18xf32> to vector<4x16xf32>
    %c16_103 = arith.constant 16 : index
    %c48_104 = arith.constant 48 : index
    %119 = vector.load %arg6[%c16_103, %c48_104] : memref<36x128xf32, #tpu.memory_space<vmem>>, vector<4x16xf32>
    tpu.vector_store %arg6[%c16_103, %c48_104], %118 {strides = array<i32>} : memref<36x128xf32, #tpu.memory_space<vmem>>, vector<4x16xf32>,
    %120 = vector.extract_strided_slice %115 {offsets = [0, 2], sizes = [4, 16], strides = [1, 1]} : vector<4x18xf32> to vector<4x16xf32>
    %c20_105 = arith.constant 20 : index
    %c48_106 = arith.constant 48 : index
    %121 = vector.load %arg6[%c20_105, %c48_106] : memref<36x128xf32, #tpu.memory_space<vmem>>, vector<4x16xf32>
    tpu.vector_store %arg6[%c20_105, %c48_106], %120 {strides = array<i32>} : memref<36x128xf32, #tpu.memory_space<vmem>>, vector<4x16xf32>,
    %c3_i32_107 = arith.constant 3 : i32
    %122 = arith.addi %0, %c3_i32_107 : i32
    %c2_i32_108 = arith.constant 2 : i32
    %123 = arith.addi %122, %c2_i32_108 : i32
    %c0_109 = arith.constant 0 : index
    %124 = arith.index_cast %123 : i32 to index
    %c0_110 = arith.constant 0 : index
    %c0_111 = arith.constant 0 : index
    %125 = vector.load %arg3[%c0_109, %124, %c0_110, %c0_111] : memref<1x18x4x18xf32, #tpu.memory_space<vmem>>, vector<1x1x4x18xf32>
    %126 = vector.shape_cast %125 : vector<1x1x4x18xf32> to vector<4x18xf32>
    %127 = vector.extract_strided_slice %126 {offsets = [0, 0], sizes = [4, 16], strides = [1, 1]} : vector<4x18xf32> to vector<4x16xf32>
    %c24_112 = arith.constant 24 : index
    %c48_113 = arith.constant 48 : index
    %128 = vector.load %arg6[%c24_112, %c48_113] : memref<36x128xf32, #tpu.memory_space<vmem>>, vector<4x16xf32>
    tpu.vector_store %arg6[%c24_112, %c48_113], %127 {strides = array<i32>} : memref<36x128xf32, #tpu.memory_space<vmem>>, vector<4x16xf32>,
    %129 = vector.extract_strided_slice %126 {offsets = [0, 1], sizes = [4, 16], strides = [1, 1]} : vector<4x18xf32> to vector<4x16xf32>
    %c28_114 = arith.constant 28 : index
    %c48_115 = arith.constant 48 : index
    %130 = vector.load %arg6[%c28_114, %c48_115] : memref<36x128xf32, #tpu.memory_space<vmem>>, vector<4x16xf32>
    tpu.vector_store %arg6[%c28_114, %c48_115], %129 {strides = array<i32>} : memref<36x128xf32, #tpu.memory_space<vmem>>, vector<4x16xf32>,
    %131 = vector.extract_strided_slice %126 {offsets = [0, 2], sizes = [4, 16], strides = [1, 1]} : vector<4x18xf32> to vector<4x16xf32>
    %c32_116 = arith.constant 32 : index
    %c48_117 = arith.constant 48 : index
    %132 = vector.load %arg6[%c32_116, %c48_117] : memref<36x128xf32, #tpu.memory_space<vmem>>, vector<4x16xf32>
    tpu.vector_store %arg6[%c32_116, %c48_117], %131 {strides = array<i32>} : memref<36x128xf32, #tpu.memory_space<vmem>>, vector<4x16xf32>,
    %c4_i32 = arith.constant 4 : i32
    %133 = arith.addi %0, %c4_i32 : i32
    %c0_i32_118 = arith.constant 0 : i32
    %134 = arith.addi %133, %c0_i32_118 : i32
    %c0_119 = arith.constant 0 : index
    %135 = arith.index_cast %134 : i32 to index
    %c0_120 = arith.constant 0 : index
    %c0_121 = arith.constant 0 : index
    %136 = vector.load %arg3[%c0_119, %135, %c0_120, %c0_121] : memref<1x18x4x18xf32, #tpu.memory_space<vmem>>, vector<1x1x4x18xf32>
    %137 = vector.shape_cast %136 : vector<1x1x4x18xf32> to vector<4x18xf32>
    %138 = vector.extract_strided_slice %137 {offsets = [0, 0], sizes = [4, 16], strides = [1, 1]} : vector<4x18xf32> to vector<4x16xf32>
    %c0_122 = arith.constant 0 : index
    %c64 = arith.constant 64 : index
    %139 = vector.load %arg6[%c0_122, %c64] : memref<36x128xf32, #tpu.memory_space<vmem>>, vector<4x16xf32>
    tpu.vector_store %arg6[%c0_122, %c64], %138 {strides = array<i32>} : memref<36x128xf32, #tpu.memory_space<vmem>>, vector<4x16xf32>,
    %140 = vector.extract_strided_slice %137 {offsets = [0, 1], sizes = [4, 16], strides = [1, 1]} : vector<4x18xf32> to vector<4x16xf32>
    %c4_123 = arith.constant 4 : index
    %c64_124 = arith.constant 64 : index
    %141 = vector.load %arg6[%c4_123, %c64_124] : memref<36x128xf32, #tpu.memory_space<vmem>>, vector<4x16xf32>
    tpu.vector_store %arg6[%c4_123, %c64_124], %140 {strides = array<i32>} : memref<36x128xf32, #tpu.memory_space<vmem>>, vector<4x16xf32>,
    %142 = vector.extract_strided_slice %137 {offsets = [0, 2], sizes = [4, 16], strides = [1, 1]} : vector<4x18xf32> to vector<4x16xf32>
    %c8_125 = arith.constant 8 : index
    %c64_126 = arith.constant 64 : index
    %143 = vector.load %arg6[%c8_125, %c64_126] : memref<36x128xf32, #tpu.memory_space<vmem>>, vector<4x16xf32>
    tpu.vector_store %arg6[%c8_125, %c64_126], %142 {strides = array<i32>} : memref<36x128xf32, #tpu.memory_space<vmem>>, vector<4x16xf32>,
    %c4_i32_127 = arith.constant 4 : i32
    %144 = arith.addi %0, %c4_i32_127 : i32
    %c1_i32_128 = arith.constant 1 : i32
    %145 = arith.addi %144, %c1_i32_128 : i32
    %c0_129 = arith.constant 0 : index
    %146 = arith.index_cast %145 : i32 to index
    %c0_130 = arith.constant 0 : index
    %c0_131 = arith.constant 0 : index
    %147 = vector.load %arg3[%c0_129, %146, %c0_130, %c0_131] : memref<1x18x4x18xf32, #tpu.memory_space<vmem>>, vector<1x1x4x18xf32>
    %148 = vector.shape_cast %147 : vector<1x1x4x18xf32> to vector<4x18xf32>
    %149 = vector.extract_strided_slice %148 {offsets = [0, 0], sizes = [4, 16], strides = [1, 1]} : vector<4x18xf32> to vector<4x16xf32>
    %c12_132 = arith.constant 12 : index
    %c64_133 = arith.constant 64 : index
    %150 = vector.load %arg6[%c12_132, %c64_133] : memref<36x128xf32, #tpu.memory_space<vmem>>, vector<4x16xf32>
    tpu.vector_store %arg6[%c12_132, %c64_133], %149 {strides = array<i32>} : memref<36x128xf32, #tpu.memory_space<vmem>>, vector<4x16xf32>,
    %151 = vector.extract_strided_slice %148 {offsets = [0, 1], sizes = [4, 16], strides = [1, 1]} : vector<4x18xf32> to vector<4x16xf32>
    %c16_134 = arith.constant 16 : index
    %c64_135 = arith.constant 64 : index
    %152 = vector.load %arg6[%c16_134, %c64_135] : memref<36x128xf32, #tpu.memory_space<vmem>>, vector<4x16xf32>
    tpu.vector_store %arg6[%c16_134, %c64_135], %151 {strides = array<i32>} : memref<36x128xf32, #tpu.memory_space<vmem>>, vector<4x16xf32>,
    %153 = vector.extract_strided_slice %148 {offsets = [0, 2], sizes = [4, 16], strides = [1, 1]} : vector<4x18xf32> to vector<4x16xf32>
    %c20_136 = arith.constant 20 : index
    %c64_137 = arith.constant 64 : index
    %154 = vector.load %arg6[%c20_136, %c64_137] : memref<36x128xf32, #tpu.memory_space<vmem>>, vector<4x16xf32>
    tpu.vector_store %arg6[%c20_136, %c64_137], %153 {strides = array<i32>} : memref<36x128xf32, #tpu.memory_space<vmem>>, vector<4x16xf32>,
    %c4_i32_138 = arith.constant 4 : i32
    %155 = arith.addi %0, %c4_i32_138 : i32
    %c2_i32_139 = arith.constant 2 : i32
    %156 = arith.addi %155, %c2_i32_139 : i32
    %c0_140 = arith.constant 0 : index
    %157 = arith.index_cast %156 : i32 to index
    %c0_141 = arith.constant 0 : index
    %c0_142 = arith.constant 0 : index
    %158 = vector.load %arg3[%c0_140, %157, %c0_141, %c0_142] : memref<1x18x4x18xf32, #tpu.memory_space<vmem>>, vector<1x1x4x18xf32>
    %159 = vector.shape_cast %158 : vector<1x1x4x18xf32> to vector<4x18xf32>
    %160 = vector.extract_strided_slice %159 {offsets = [0, 0], sizes = [4, 16], strides = [1, 1]} : vector<4x18xf32> to vector<4x16xf32>
    %c24_143 = arith.constant 24 : index
    %c64_144 = arith.constant 64 : index
    %161 = vector.load %arg6[%c24_143, %c64_144] : memref<36x128xf32, #tpu.memory_space<vmem>>, vector<4x16xf32>
    tpu.vector_store %arg6[%c24_143, %c64_144], %160 {strides = array<i32>} : memref<36x128xf32, #tpu.memory_space<vmem>>, vector<4x16xf32>,
    %162 = vector.extract_strided_slice %159 {offsets = [0, 1], sizes = [4, 16], strides = [1, 1]} : vector<4x18xf32> to vector<4x16xf32>
    %c28_145 = arith.constant 28 : index
    %c64_146 = arith.constant 64 : index
    %163 = vector.load %arg6[%c28_145, %c64_146] : memref<36x128xf32, #tpu.memory_space<vmem>>, vector<4x16xf32>
    tpu.vector_store %arg6[%c28_145, %c64_146], %162 {strides = array<i32>} : memref<36x128xf32, #tpu.memory_space<vmem>>, vector<4x16xf32>,
    %164 = vector.extract_strided_slice %159 {offsets = [0, 2], sizes = [4, 16], strides = [1, 1]} : vector<4x18xf32> to vector<4x16xf32>
    %c32_147 = arith.constant 32 : index
    %c64_148 = arith.constant 64 : index
    %165 = vector.load %arg6[%c32_147, %c64_148] : memref<36x128xf32, #tpu.memory_space<vmem>>, vector<4x16xf32>
    tpu.vector_store %arg6[%c32_147, %c64_148], %164 {strides = array<i32>} : memref<36x128xf32, #tpu.memory_space<vmem>>, vector<4x16xf32>,
    %c5_i32 = arith.constant 5 : i32
    %166 = arith.addi %0, %c5_i32 : i32
    %c0_i32_149 = arith.constant 0 : i32
    %167 = arith.addi %166, %c0_i32_149 : i32
    %c0_150 = arith.constant 0 : index
    %168 = arith.index_cast %167 : i32 to index
    %c0_151 = arith.constant 0 : index
    %c0_152 = arith.constant 0 : index
    %169 = vector.load %arg3[%c0_150, %168, %c0_151, %c0_152] : memref<1x18x4x18xf32, #tpu.memory_space<vmem>>, vector<1x1x4x18xf32>
    %170 = vector.shape_cast %169 : vector<1x1x4x18xf32> to vector<4x18xf32>
    %171 = vector.extract_strided_slice %170 {offsets = [0, 0], sizes = [4, 16], strides = [1, 1]} : vector<4x18xf32> to vector<4x16xf32>
    %c0_153 = arith.constant 0 : index
    %c80 = arith.constant 80 : index
    %172 = vector.load %arg6[%c0_153, %c80] : memref<36x128xf32, #tpu.memory_space<vmem>>, vector<4x16xf32>
    tpu.vector_store %arg6[%c0_153, %c80], %171 {strides = array<i32>} : memref<36x128xf32, #tpu.memory_space<vmem>>, vector<4x16xf32>,
    %173 = vector.extract_strided_slice %170 {offsets = [0, 1], sizes = [4, 16], strides = [1, 1]} : vector<4x18xf32> to vector<4x16xf32>
    %c4_154 = arith.constant 4 : index
    %c80_155 = arith.constant 80 : index
    %174 = vector.load %arg6[%c4_154, %c80_155] : memref<36x128xf32, #tpu.memory_space<vmem>>, vector<4x16xf32>
    tpu.vector_store %arg6[%c4_154, %c80_155], %173 {strides = array<i32>} : memref<36x128xf32, #tpu.memory_space<vmem>>, vector<4x16xf32>,
    %175 = vector.extract_strided_slice %170 {offsets = [0, 2], sizes = [4, 16], strides = [1, 1]} : vector<4x18xf32> to vector<4x16xf32>
    %c8_156 = arith.constant 8 : index
    %c80_157 = arith.constant 80 : index
    %176 = vector.load %arg6[%c8_156, %c80_157] : memref<36x128xf32, #tpu.memory_space<vmem>>, vector<4x16xf32>
    tpu.vector_store %arg6[%c8_156, %c80_157], %175 {strides = array<i32>} : memref<36x128xf32, #tpu.memory_space<vmem>>, vector<4x16xf32>,
    %c5_i32_158 = arith.constant 5 : i32
    %177 = arith.addi %0, %c5_i32_158 : i32
    %c1_i32_159 = arith.constant 1 : i32
    %178 = arith.addi %177, %c1_i32_159 : i32
    %c0_160 = arith.constant 0 : index
    %179 = arith.index_cast %178 : i32 to index
    %c0_161 = arith.constant 0 : index
    %c0_162 = arith.constant 0 : index
    %180 = vector.load %arg3[%c0_160, %179, %c0_161, %c0_162] : memref<1x18x4x18xf32, #tpu.memory_space<vmem>>, vector<1x1x4x18xf32>
    %181 = vector.shape_cast %180 : vector<1x1x4x18xf32> to vector<4x18xf32>
    %182 = vector.extract_strided_slice %181 {offsets = [0, 0], sizes = [4, 16], strides = [1, 1]} : vector<4x18xf32> to vector<4x16xf32>
    %c12_163 = arith.constant 12 : index
    %c80_164 = arith.constant 80 : index
    %183 = vector.load %arg6[%c12_163, %c80_164] : memref<36x128xf32, #tpu.memory_space<vmem>>, vector<4x16xf32>
    tpu.vector_store %arg6[%c12_163, %c80_164], %182 {strides = array<i32>} : memref<36x128xf32, #tpu.memory_space<vmem>>, vector<4x16xf32>,
    %184 = vector.extract_strided_slice %181 {offsets = [0, 1], sizes = [4, 16], strides = [1, 1]} : vector<4x18xf32> to vector<4x16xf32>
    %c16_165 = arith.constant 16 : index
    %c80_166 = arith.constant 80 : index
    %185 = vector.load %arg6[%c16_165, %c80_166] : memref<36x128xf32, #tpu.memory_space<vmem>>, vector<4x16xf32>
    tpu.vector_store %arg6[%c16_165, %c80_166], %184 {strides = array<i32>} : memref<36x128xf32, #tpu.memory_space<vmem>>, vector<4x16xf32>,
    %186 = vector.extract_strided_slice %181 {offsets = [0, 2], sizes = [4, 16], strides = [1, 1]} : vector<4x18xf32> to vector<4x16xf32>
    %c20_167 = arith.constant 20 : index
    %c80_168 = arith.constant 80 : index
    %187 = vector.load %arg6[%c20_167, %c80_168] : memref<36x128xf32, #tpu.memory_space<vmem>>, vector<4x16xf32>
    tpu.vector_store %arg6[%c20_167, %c80_168], %186 {strides = array<i32>} : memref<36x128xf32, #tpu.memory_space<vmem>>, vector<4x16xf32>,
    %c5_i32_169 = arith.constant 5 : i32
    %188 = arith.addi %0, %c5_i32_169 : i32
    %c2_i32_170 = arith.constant 2 : i32
    %189 = arith.addi %188, %c2_i32_170 : i32
    %c0_171 = arith.constant 0 : index
    %190 = arith.index_cast %189 : i32 to index
    %c0_172 = arith.constant 0 : index
    %c0_173 = arith.constant 0 : index
    %191 = vector.load %arg3[%c0_171, %190, %c0_172, %c0_173] : memref<1x18x4x18xf32, #tpu.memory_space<vmem>>, vector<1x1x4x18xf32>
    %192 = vector.shape_cast %191 : vector<1x1x4x18xf32> to vector<4x18xf32>
    %193 = vector.extract_strided_slice %192 {offsets = [0, 0], sizes = [4, 16], strides = [1, 1]} : vector<4x18xf32> to vector<4x16xf32>
    %c24_174 = arith.constant 24 : index
    %c80_175 = arith.constant 80 : index
    %194 = vector.load %arg6[%c24_174, %c80_175] : memref<36x128xf32, #tpu.memory_space<vmem>>, vector<4x16xf32>
    tpu.vector_store %arg6[%c24_174, %c80_175], %193 {strides = array<i32>} : memref<36x128xf32, #tpu.memory_space<vmem>>, vector<4x16xf32>,
    %195 = vector.extract_strided_slice %192 {offsets = [0, 1], sizes = [4, 16], strides = [1, 1]} : vector<4x18xf32> to vector<4x16xf32>
    %c28_176 = arith.constant 28 : index
    %c80_177 = arith.constant 80 : index
    %196 = vector.load %arg6[%c28_176, %c80_177] : memref<36x128xf32, #tpu.memory_space<vmem>>, vector<4x16xf32>
    tpu.vector_store %arg6[%c28_176, %c80_177], %195 {strides = array<i32>} : memref<36x128xf32, #tpu.memory_space<vmem>>, vector<4x16xf32>,
    %197 = vector.extract_strided_slice %192 {offsets = [0, 2], sizes = [4, 16], strides = [1, 1]} : vector<4x18xf32> to vector<4x16xf32>
    %c32_178 = arith.constant 32 : index
    %c80_179 = arith.constant 80 : index
    %198 = vector.load %arg6[%c32_178, %c80_179] : memref<36x128xf32, #tpu.memory_space<vmem>>, vector<4x16xf32>
    tpu.vector_store %arg6[%c32_178, %c80_179], %197 {strides = array<i32>} : memref<36x128xf32, #tpu.memory_space<vmem>>, vector<4x16xf32>,
    %c6_i32 = arith.constant 6 : i32
    %199 = arith.addi %0, %c6_i32 : i32
    %c0_i32_180 = arith.constant 0 : i32
    %200 = arith.addi %199, %c0_i32_180 : i32
    %c0_181 = arith.constant 0 : index
    %201 = arith.index_cast %200 : i32 to index
    %c0_182 = arith.constant 0 : index
    %c0_183 = arith.constant 0 : index
    %202 = vector.load %arg3[%c0_181, %201, %c0_182, %c0_183] : memref<1x18x4x18xf32, #tpu.memory_space<vmem>>, vector<1x1x4x18xf32>
    %203 = vector.shape_cast %202 : vector<1x1x4x18xf32> to vector<4x18xf32>
    %204 = vector.extract_strided_slice %203 {offsets = [0, 0], sizes = [4, 16], strides = [1, 1]} : vector<4x18xf32> to vector<4x16xf32>
    %c0_184 = arith.constant 0 : index
    %c96 = arith.constant 96 : index
    %205 = vector.load %arg6[%c0_184, %c96] : memref<36x128xf32, #tpu.memory_space<vmem>>, vector<4x16xf32>
    tpu.vector_store %arg6[%c0_184, %c96], %204 {strides = array<i32>} : memref<36x128xf32, #tpu.memory_space<vmem>>, vector<4x16xf32>,
    %206 = vector.extract_strided_slice %203 {offsets = [0, 1], sizes = [4, 16], strides = [1, 1]} : vector<4x18xf32> to vector<4x16xf32>
    %c4_185 = arith.constant 4 : index
    %c96_186 = arith.constant 96 : index
    %207 = vector.load %arg6[%c4_185, %c96_186] : memref<36x128xf32, #tpu.memory_space<vmem>>, vector<4x16xf32>
    tpu.vector_store %arg6[%c4_185, %c96_186], %206 {strides = array<i32>} : memref<36x128xf32, #tpu.memory_space<vmem>>, vector<4x16xf32>,
    %208 = vector.extract_strided_slice %203 {offsets = [0, 2], sizes = [4, 16], strides = [1, 1]} : vector<4x18xf32> to vector<4x16xf32>
    %c8_187 = arith.constant 8 : index
    %c96_188 = arith.constant 96 : index
    %209 = vector.load %arg6[%c8_187, %c96_188] : memref<36x128xf32, #tpu.memory_space<vmem>>, vector<4x16xf32>
    tpu.vector_store %arg6[%c8_187, %c96_188], %208 {strides = array<i32>} : memref<36x128xf32, #tpu.memory_space<vmem>>, vector<4x16xf32>,
    %c6_i32_189 = arith.constant 6 : i32
    %210 = arith.addi %0, %c6_i32_189 : i32
    %c1_i32_190 = arith.constant 1 : i32
    %211 = arith.addi %210, %c1_i32_190 : i32
    %c0_191 = arith.constant 0 : index
    %212 = arith.index_cast %211 : i32 to index
    %c0_192 = arith.constant 0 : index
    %c0_193 = arith.constant 0 : index
    %213 = vector.load %arg3[%c0_191, %212, %c0_192, %c0_193] : memref<1x18x4x18xf32, #tpu.memory_space<vmem>>, vector<1x1x4x18xf32>
    %214 = vector.shape_cast %213 : vector<1x1x4x18xf32> to vector<4x18xf32>
    %215 = vector.extract_strided_slice %214 {offsets = [0, 0], sizes = [4, 16], strides = [1, 1]} : vector<4x18xf32> to vector<4x16xf32>
    %c12_194 = arith.constant 12 : index
    %c96_195 = arith.constant 96 : index
    %216 = vector.load %arg6[%c12_194, %c96_195] : memref<36x128xf32, #tpu.memory_space<vmem>>, vector<4x16xf32>
    tpu.vector_store %arg6[%c12_194, %c96_195], %215 {strides = array<i32>} : memref<36x128xf32, #tpu.memory_space<vmem>>, vector<4x16xf32>,
    %217 = vector.extract_strided_slice %214 {offsets = [0, 1], sizes = [4, 16], strides = [1, 1]} : vector<4x18xf32> to vector<4x16xf32>
    %c16_196 = arith.constant 16 : index
    %c96_197 = arith.constant 96 : index
    %218 = vector.load %arg6[%c16_196, %c96_197] : memref<36x128xf32, #tpu.memory_space<vmem>>, vector<4x16xf32>
    tpu.vector_store %arg6[%c16_196, %c96_197], %217 {strides = array<i32>} : memref<36x128xf32, #tpu.memory_space<vmem>>, vector<4x16xf32>,
    %219 = vector.extract_strided_slice %214 {offsets = [0, 2], sizes = [4, 16], strides = [1, 1]} : vector<4x18xf32> to vector<4x16xf32>
    %c20_198 = arith.constant 20 : index
    %c96_199 = arith.constant 96 : index
    %220 = vector.load %arg6[%c20_198, %c96_199] : memref<36x128xf32, #tpu.memory_space<vmem>>, vector<4x16xf32>
    tpu.vector_store %arg6[%c20_198, %c96_199], %219 {strides = array<i32>} : memref<36x128xf32, #tpu.memory_space<vmem>>, vector<4x16xf32>,
    %c6_i32_200 = arith.constant 6 : i32
    %221 = arith.addi %0, %c6_i32_200 : i32
    %c2_i32_201 = arith.constant 2 : i32
    %222 = arith.addi %221, %c2_i32_201 : i32
    %c0_202 = arith.constant 0 : index
    %223 = arith.index_cast %222 : i32 to index
    %c0_203 = arith.constant 0 : index
    %c0_204 = arith.constant 0 : index
    %224 = vector.load %arg3[%c0_202, %223, %c0_203, %c0_204] : memref<1x18x4x18xf32, #tpu.memory_space<vmem>>, vector<1x1x4x18xf32>
    %225 = vector.shape_cast %224 : vector<1x1x4x18xf32> to vector<4x18xf32>
    %226 = vector.extract_strided_slice %225 {offsets = [0, 0], sizes = [4, 16], strides = [1, 1]} : vector<4x18xf32> to vector<4x16xf32>
    %c24_205 = arith.constant 24 : index
    %c96_206 = arith.constant 96 : index
    %227 = vector.load %arg6[%c24_205, %c96_206] : memref<36x128xf32, #tpu.memory_space<vmem>>, vector<4x16xf32>
    tpu.vector_store %arg6[%c24_205, %c96_206], %226 {strides = array<i32>} : memref<36x128xf32, #tpu.memory_space<vmem>>, vector<4x16xf32>,
    %228 = vector.extract_strided_slice %225 {offsets = [0, 1], sizes = [4, 16], strides = [1, 1]} : vector<4x18xf32> to vector<4x16xf32>
    %c28_207 = arith.constant 28 : index
    %c96_208 = arith.constant 96 : index
    %229 = vector.load %arg6[%c28_207, %c96_208] : memref<36x128xf32, #tpu.memory_space<vmem>>, vector<4x16xf32>
    tpu.vector_store %arg6[%c28_207, %c96_208], %228 {strides = array<i32>} : memref<36x128xf32, #tpu.memory_space<vmem>>, vector<4x16xf32>,
    %230 = vector.extract_strided_slice %225 {offsets = [0, 2], sizes = [4, 16], strides = [1, 1]} : vector<4x18xf32> to vector<4x16xf32>
    %c32_209 = arith.constant 32 : index
    %c96_210 = arith.constant 96 : index
    %231 = vector.load %arg6[%c32_209, %c96_210] : memref<36x128xf32, #tpu.memory_space<vmem>>, vector<4x16xf32>
    tpu.vector_store %arg6[%c32_209, %c96_210], %230 {strides = array<i32>} : memref<36x128xf32, #tpu.memory_space<vmem>>, vector<4x16xf32>,
    %c7_i32 = arith.constant 7 : i32
    %232 = arith.addi %0, %c7_i32 : i32
    %c0_i32_211 = arith.constant 0 : i32
    %233 = arith.addi %232, %c0_i32_211 : i32
    %c0_212 = arith.constant 0 : index
    %234 = arith.index_cast %233 : i32 to index
    %c0_213 = arith.constant 0 : index
    %c0_214 = arith.constant 0 : index
    %235 = vector.load %arg3[%c0_212, %234, %c0_213, %c0_214] : memref<1x18x4x18xf32, #tpu.memory_space<vmem>>, vector<1x1x4x18xf32>
    %236 = vector.shape_cast %235 : vector<1x1x4x18xf32> to vector<4x18xf32>
    %237 = vector.extract_strided_slice %236 {offsets = [0, 0], sizes = [4, 16], strides = [1, 1]} : vector<4x18xf32> to vector<4x16xf32>
    %c0_215 = arith.constant 0 : index
    %c112 = arith.constant 112 : index
    %238 = vector.load %arg6[%c0_215, %c112] : memref<36x128xf32, #tpu.memory_space<vmem>>, vector<4x16xf32>
    tpu.vector_store %arg6[%c0_215, %c112], %237 {strides = array<i32>} : memref<36x128xf32, #tpu.memory_space<vmem>>, vector<4x16xf32>,
    %239 = vector.extract_strided_slice %236 {offsets = [0, 1], sizes = [4, 16], strides = [1, 1]} : vector<4x18xf32> to vector<4x16xf32>
    %c4_216 = arith.constant 4 : index
    %c112_217 = arith.constant 112 : index
    %240 = vector.load %arg6[%c4_216, %c112_217] : memref<36x128xf32, #tpu.memory_space<vmem>>, vector<4x16xf32>
    tpu.vector_store %arg6[%c4_216, %c112_217], %239 {strides = array<i32>} : memref<36x128xf32, #tpu.memory_space<vmem>>, vector<4x16xf32>,
    %241 = vector.extract_strided_slice %236 {offsets = [0, 2], sizes = [4, 16], strides = [1, 1]} : vector<4x18xf32> to vector<4x16xf32>
    %c8_218 = arith.constant 8 : index
    %c112_219 = arith.constant 112 : index
    %242 = vector.load %arg6[%c8_218, %c112_219] : memref<36x128xf32, #tpu.memory_space<vmem>>, vector<4x16xf32>
    tpu.vector_store %arg6[%c8_218, %c112_219], %241 {strides = array<i32>} : memref<36x128xf32, #tpu.memory_space<vmem>>, vector<4x16xf32>,
    %c7_i32_220 = arith.constant 7 : i32
    %243 = arith.addi %0, %c7_i32_220 : i32
    %c1_i32_221 = arith.constant 1 : i32
    %244 = arith.addi %243, %c1_i32_221 : i32
    %c0_222 = arith.constant 0 : index
    %245 = arith.index_cast %244 : i32 to index
    %c0_223 = arith.constant 0 : index
    %c0_224 = arith.constant 0 : index
    %246 = vector.load %arg3[%c0_222, %245, %c0_223, %c0_224] : memref<1x18x4x18xf32, #tpu.memory_space<vmem>>, vector<1x1x4x18xf32>
    %247 = vector.shape_cast %246 : vector<1x1x4x18xf32> to vector<4x18xf32>
    %248 = vector.extract_strided_slice %247 {offsets = [0, 0], sizes = [4, 16], strides = [1, 1]} : vector<4x18xf32> to vector<4x16xf32>
    %c12_225 = arith.constant 12 : index
    %c112_226 = arith.constant 112 : index
    %249 = vector.load %arg6[%c12_225, %c112_226] : memref<36x128xf32, #tpu.memory_space<vmem>>, vector<4x16xf32>
    tpu.vector_store %arg6[%c12_225, %c112_226], %248 {strides = array<i32>} : memref<36x128xf32, #tpu.memory_space<vmem>>, vector<4x16xf32>,
    %250 = vector.extract_strided_slice %247 {offsets = [0, 1], sizes = [4, 16], strides = [1, 1]} : vector<4x18xf32> to vector<4x16xf32>
    %c16_227 = arith.constant 16 : index
    %c112_228 = arith.constant 112 : index
    %251 = vector.load %arg6[%c16_227, %c112_228] : memref<36x128xf32, #tpu.memory_space<vmem>>, vector<4x16xf32>
    tpu.vector_store %arg6[%c16_227, %c112_228], %250 {strides = array<i32>} : memref<36x128xf32, #tpu.memory_space<vmem>>, vector<4x16xf32>,
    %252 = vector.extract_strided_slice %247 {offsets = [0, 2], sizes = [4, 16], strides = [1, 1]} : vector<4x18xf32> to vector<4x16xf32>
    %c20_229 = arith.constant 20 : index
    %c112_230 = arith.constant 112 : index
    %253 = vector.load %arg6[%c20_229, %c112_230] : memref<36x128xf32, #tpu.memory_space<vmem>>, vector<4x16xf32>
    tpu.vector_store %arg6[%c20_229, %c112_230], %252 {strides = array<i32>} : memref<36x128xf32, #tpu.memory_space<vmem>>, vector<4x16xf32>,
    %c7_i32_231 = arith.constant 7 : i32
    %254 = arith.addi %0, %c7_i32_231 : i32
    %c2_i32_232 = arith.constant 2 : i32
    %255 = arith.addi %254, %c2_i32_232 : i32
    %c0_233 = arith.constant 0 : index
    %256 = arith.index_cast %255 : i32 to index
    %c0_234 = arith.constant 0 : index
    %c0_235 = arith.constant 0 : index
    %257 = vector.load %arg3[%c0_233, %256, %c0_234, %c0_235] : memref<1x18x4x18xf32, #tpu.memory_space<vmem>>, vector<1x1x4x18xf32>
    %258 = vector.shape_cast %257 : vector<1x1x4x18xf32> to vector<4x18xf32>
    %259 = vector.extract_strided_slice %258 {offsets = [0, 0], sizes = [4, 16], strides = [1, 1]} : vector<4x18xf32> to vector<4x16xf32>
    %c24_236 = arith.constant 24 : index
    %c112_237 = arith.constant 112 : index
    %260 = vector.load %arg6[%c24_236, %c112_237] : memref<36x128xf32, #tpu.memory_space<vmem>>, vector<4x16xf32>
    tpu.vector_store %arg6[%c24_236, %c112_237], %259 {strides = array<i32>} : memref<36x128xf32, #tpu.memory_space<vmem>>, vector<4x16xf32>,
    %261 = vector.extract_strided_slice %258 {offsets = [0, 1], sizes = [4, 16], strides = [1, 1]} : vector<4x18xf32> to vector<4x16xf32>
    %c28_238 = arith.constant 28 : index
    %c112_239 = arith.constant 112 : index
    %262 = vector.load %arg6[%c28_238, %c112_239] : memref<36x128xf32, #tpu.memory_space<vmem>>, vector<4x16xf32>
    tpu.vector_store %arg6[%c28_238, %c112_239], %261 {strides = array<i32>} : memref<36x128xf32, #tpu.memory_space<vmem>>, vector<4x16xf32>,
    %263 = vector.extract_strided_slice %258 {offsets = [0, 2], sizes = [4, 16], strides = [1, 1]} : vector<4x18xf32> to vector<4x16xf32>
    %c32_240 = arith.constant 32 : index
    %c112_241 = arith.constant 112 : index
    %264 = vector.load %arg6[%c32_240, %c112_241] : memref<36x128xf32, #tpu.memory_space<vmem>>, vector<4x16xf32>
    tpu.vector_store %arg6[%c32_240, %c112_241], %263 {strides = array<i32>} : memref<36x128xf32, #tpu.memory_space<vmem>>, vector<4x16xf32>,
    %c0_242 = arith.constant 0 : index
    %c0_243 = arith.constant 0 : index
    %265 = vector.load %arg4[%c0_242, %c0_243] : memref<8x36xf32, #tpu.memory_space<vmem>>, vector<8x36xf32>
    %c0_244 = arith.constant 0 : index
    %c0_245 = arith.constant 0 : index
    %266 = vector.load %arg6[%c0_244, %c0_245] : memref<36x128xf32, #tpu.memory_space<vmem>>, vector<36x128xf32>
    %cst = arith.constant dense<0.000000e+00> : vector<8x128xf32>
    %267 = tpu.matmul %265, %266, %cst {dimension_numbers = #tpu.dot_dimension_numbers<[1], [0], [0], [1], [0, 0, 1, 1], [], []>} : vector<8x36xf32>, vector<36x128xf32>, vector<8x128xf32> -> vector<8x128xf32>
    %c0_246 = arith.constant 0 : index
    %c0_247 = arith.constant 0 : index
    %c0_248 = arith.constant 0 : index
    %268 = vector.load %arg5[%c0_246, %c0_247, %c0_248] : memref<1x8x128xf32, #tpu.memory_space<vmem>>, vector<1x8x128xf32>
    %269 = vector.shape_cast %268 : vector<1x8x128xf32> to vector<8x128xf32>
    %270 = vector.shape_cast %267 : vector<8x128xf32> to vector<1x8x128xf32>
    tpu.vector_store %arg5[%c0_246, %c0_247, %c0_248], %270 {strides = array<i32>} : memref<1x8x128xf32, #tpu.memory_space<vmem>>, vector<1x8x128xf32>,
    return
  }
  func.func @transform_0(%arg0: i32, %arg1: i32, %arg2: i32) -> (i32, i32, i32, i32) {
    %c0_i32 = arith.constant 0 : i32
    %c0_i32_0 = arith.constant 0 : i32
    %c0_i32_1 = arith.constant 0 : i32
    %c0_i32_2 = arith.constant 0 : i32
    return %arg0, %c0_i32, %c0_i32_0, %c0_i32_1 : i32, i32, i32, i32
  }
  func.func @transform_1(%arg0: i32, %arg1: i32, %arg2: i32) -> (i32, i32) {
    %c0_i32 = arith.constant 0 : i32
    %c0_i32_0 = arith.constant 0 : i32
    return %arg1, %c0_i32 : i32, i32
  }
  func.func @transform_2(%arg0: i32, %arg1: i32, %arg2: i32) -> (i32, i32, i32) {
    %c0_i32 = arith.constant 0 : i32
    return %arg0, %arg1, %arg2 : i32, i32, i32
  }
}

</mosaic_0001>

<bundles_post_ra>
// kernel: separable_conv2d.1
= control target key start
LH: loop header
LB: loop body
LE: loop exit
PB: predicated region body
PF: predicated region fallthrough
CT: control target
= control target key end

     0   :  { %s1040_s9 = smov 0   ;;  %s1042_s10 = smov 0   ;;  %s1289_s0 = inlined_call_operand.vmem [shape: f32[2,18,4,18], index: 0, kind: input, shape index: {}]   ;;  %s1290_s1 = inlined_call_operand.vmem [shape: f32[8,36], index: 1, kind: input, shape index: {}]   ;;  %s1291_s2 = inlined_call_operand.vmem [shape: f32[2,8,256], index: 2, kind: output, shape index: {}]  }
   0x1   :  { %s1044_s11 = smov 0   ;;  %s1046_s12 = smov 0  }
   0x2   :  { %s1048_s13 = smov 0  }
   0x3 LB: > { %s24_s14 = sadd.s32 1, %s989_s11  ;;  %s31_s15 = sadd.s32 1, %s993_s12  ;;  %s997_s13 = sphi %s1048_s13, %s12_s13   ;;  %s993_s12 = sphi %s1046_s12, %s1295_s12   ;;  %s989_s11 = sphi %s1044_s11, %s1294_s11   ;;  %s985_s10 = sphi %s1042_s10, %s1293_s10   ;;  %s981_s9 = sphi %s1040_s9, %s1292_s9  }
   0x4   : > { %p25_p0 = scmp.ge.s32.totalorder %s24_s14, 2  ;;  %p806_p1 = scmp.ge.s32.totalorder %s997_s13, 1 }
   0x5   : > { %p144_p2 = scmp.lt.s32.totalorder %s997_s13, 5 }
   0x6   : > { %s1297_s14 = smov (%p25_p0, %s24_s14), 0  ;;  %s1299_s15 = smov (!%p25_p0, %s31_s15), %s993_s12 }
   0x7   : > { %p145_p3 = pnand %p806_p1, %p144_p2  ;;  %p33_p4 = scmp.ge.s32.totalorder %s1299_s15, 2 }
   0x8   : > { %p177_p5 = scmp.lt.s32.totalorder (!%p145_p3), %s985_s10, 1  ;;  %s857_s17 = sshll.u32 (!%p145_p3), %s981_s9, 5  ;;  %vm202_vm0 = vcmask (!%p145_p3), 125952   ;;  %v1022_v20 = vmov (!%p145_p3), 0.0|0.0   ;;  %vm246_vm1 = vcmask (!%p145_p3), 257152   ;;  %vm292_vm2 = vcmask (!%p145_p3), 388352  }
   0x9   : > { %s1301_s15 = smov (%p33_p4, %s1299_s15), 0  ;;  %148 = sbr.rel (%p145_p3) target bundleno = 495 (0x1ef), region = 28 }
   0xa   : > { %s999_s22 = smov (!%p145_p3), 127   ;;  %s1000_s23 = smov (!%p145_p3), 16   ;;  %886 = vmatprep.subr.bf16.mxu0 (!%p145_p3), %v1022_v20  ;;  %vm1023_vm3 = vmmov (!%p145_p3), 0   ;;  %v1024_v35 = vmov (!%p145_p3), 0.0   ;;  %vm338_vm4 = vcmask (!%p145_p3), 519552   ;;  %vm384_vm5 = vcmask (!%p145_p3), 650752  }
   0xb   : > { %s1001_s24 = smov (!%p145_p3), 126   ;;  %s1002_s25 = smov (!%p145_p3), 15   ;;  %883 = vmatprep.mubr.msk.f32.mxu0 (!%p145_p3), %vm1023_vm3, %v1024_v35  ;;  %vm430_vm6 = vcmask (!%p145_p3), 781952   ;;  %vm476_vm7 = vcmask (!%p145_p3), 913152   ;;  %vm522_vm8 = vcmask (!%p145_p3), 1044352   ;;  %vm573_vm9 = vcmask (!%p145_p3), 1043456  }
   0xc   : > { %s1003_s26 = smov (!%p145_p3), 14   ;;  %s1004_s27 = smov (!%p145_p3), 32   ;;  %vm569_vm10 = vcmask (!%p145_p3), 293888  }
   0xd   : > { %s1005_s28 = smov (!%p145_p3), 31   ;;  %s1006_s29 = smov (!%p145_p3), 30  }
   0xe   : > { %s1007_s30 = smov (!%p145_p3), 48   ;;  %s1008_s3 = smov (!%p145_p3), 47  }
   0xf   : > { %s1009_s4 = smov (!%p145_p3), 46   ;;  %s1010_s5 = smov (!%p145_p3), 64  }
  0x10   : > { %s1303_s10 = smov (!%p177_p5, %s985_s10), 1  ;;  %s1011_s6 = smov 63  }
  0x11   : > { %s892_s16 = smul.u32 72, %s1303_s10  ;;  %s1012_s7 = smov 62  }
  0x12   : > { %s1013_s8 = smov 80   ;;  %s1016_s18 = smov 96  }
  0x13   : > { %s181_s20 = scalar_lea.vmem %s1289_s0, %s892_s16  ;;  %s1014_s16 = smov 79  }
  0x14   : > { %s1079_s21 = scalar_lea.vmem %s181_s20, %s857_s17  ;;  %s1015_s17 = smov 78  }
  0x15   : > { %v201_v0 = vld [vmem:[%s1079_s21] sm:$0xf]  ;;  %v818_v1 = vld [vmem:[%s1079_s21 + $0x4] sm:$0xf]  ;;  %v1088_v3 = vld [vmem:[%s1079_s21 + $0x8] sm:$0xf] }
  0x16   : > { %205 = vrot.lane.b32.xlu0 %v201_v0, %s999_s22  ;;  %243 = vrot.lane.b32.xlu1 %v818_v1, %s1000_s23  ;;  %203 = vst.msk [vmem:[#allocation2] sm:$0xf] %vm202_vm0, %v201_v0  ;;  %v814_v2 = vld [vmem:[%s1079_s21 + $0x4] sm:$0xf]  ;;  %231 = vst.msk [vmem:[#allocation2 + $0x18] sm:$0xf] %vm202_vm0, %v1088_v3 }
  0x17   : > { %217 = vst.msk [vmem:[#allocation2 + $0xc] sm:$0xf] %vm202_vm0, %v814_v2  ;;  %v819_v4 = vld [vmem:[%s1079_s21 + $0x8] sm:$0xf]  ;;  %v824_v6 = vld [vmem:[%s1079_s21 + $0xc] sm:$0xf] }
  0x18   : > { %v823_v5 = vld [vmem:[%s1079_s21 + $0x8] sm:$0xf]  ;;  %v828_v7 = vld [vmem:[%s1079_s21 + $0xc] sm:$0xf]  ;;  %v829_v8 = vld [vmem:[%s1079_s21 + $0x10] sm:$0xf] }
  0x19   : > { %v833_v9 = vld [vmem:[%s1079_s21 + $0x10] sm:$0xf]  ;;  %v834_v10 = vld [vmem:[%s1079_s21 + $0x14] sm:$0xf]  ;;  %v1122_v11 = vld [vmem:[%s1079_s21 + $0xc] sm:$0xf] }
  0x1a   : > { %209 = vrot.lane.b32.xlu0 %v201_v0, %s1001_s24  ;;  %248 = vrot.lane.b32.xlu1 %v818_v1, %s1002_s25  ;;  %v838_v12 = vld [vmem:[%s1079_s21 + $0x14] sm:$0xf]  ;;  %v839_v13 = vld [vmem:[%s1079_s21 + $0x18] sm:$0xf]  ;;  %s1017_s19 = smov 95   ;;  %s1018_s20 = smov 94  }
  0x1b   : > { %v1137_v14 = vld [vmem:[%s1079_s21 + $0x10] sm:$0xf]  ;;  %v843_v15 = vld [vmem:[%s1079_s21 + $0x18] sm:$0xf]  ;;  %v844_v16 = vld [vmem:[%s1079_s21 + $0x1c] sm:$0xf] }
  0x1c   : > { %v832_v17 = vld [vmem:[%s1079_s21 + $0x14] sm:$0xf]  ;;  %v848_v18 = vld [vmem:[%s1079_s21 + $0x1c] sm:$0xf]  ;;  %v849_v19 = vld [vmem:[%s1079_s21 + $0x20] sm:$0xf] }
  0x1d   : > { %v837_v21 = vld [vmem:[%s1079_s21 + $0x18] sm:$0xf]  ;;  %v842_v22 = vld [vmem:[%s1079_s21 + $0x1c] sm:$0xf]  ;;  %v847_v23 = vld [vmem:[%s1079_s21 + $0x20] sm:$0xf] }
  0x1e   : > { %252 = vrot.lane.b32.xlu0 %v818_v1, %s1003_s26  ;;  %258 = vrot.lane.b32.xlu1 %v819_v4, %s1000_s23  ;;  %v852_v26 = vld [vmem:[%s1079_s21 + $0x24] sm:$0xf]  ;;  %p190_p6 = scmp.lt.s32.totalorder %s981_s9, 1 }
  0x20   : > { %s1305_s9 = smov (!%p190_p6, %s981_s9), 1 }
  0x22   : > { %289 = vrot.lane.b32.xlu0 %v823_v5, %s1004_s27  ;;  %294 = vrot.lane.b32.xlu1 %v823_v5, %s1005_s28 }
  0x26   : > { %298 = vrot.lane.b32.xlu0 %v823_v5, %s1006_s29  ;;  %304 = vrot.lane.b32.xlu1 %v824_v6, %s1004_s27 }
  0x2a   : > { %335 = vrot.lane.b32.xlu0 %v828_v7, %s1007_s30  ;;  %340 = vrot.lane.b32.xlu1 %v828_v7, %s1008_s3 }
  0x2e   : > { %344 = vrot.lane.b32.xlu0 %v828_v7, %s1009_s4  ;;  %350 = vrot.lane.b32.xlu1 %v829_v8, %s1007_s30 }
  0x32   : > { %219 = vrot.lane.b32.xlu0 %v814_v2, %s999_s22  ;;  %223 = vrot.lane.b32.xlu1 %v814_v2, %s1001_s24 }
  0x36   : > { %233 = vrot.lane.b32.xlu0 %v1088_v3, %s999_s22  ;;  %381 = vrot.lane.b32.xlu1 %v833_v9, %s1010_s5  ;;  %s1019_s22 = smov 112  }
  0x3a   : > { %386 = vrot.lane.b32.xlu0 %v833_v9, %s1011_s6  ;;  %390 = vrot.lane.b32.xlu1 %v833_v9, %s1012_s7 }
  0x3e   : > { %396 = vrot.lane.b32.xlu0 %v834_v10, %s1010_s5  ;;  %262 = vrot.lane.b32.xlu1 %v819_v4, %s1002_s25 }
  0x42   : > { %266 = vrot.lane.b32.xlu0 %v819_v4, %s1003_s26  ;;  %275 = vrot.lane.b32.xlu1 %v1122_v11, %s1000_s23  ;;  %s1020_s23 = smov 111  }
  0x46   : > { %279 = vrot.lane.b32.xlu0 %v1122_v11, %s1002_s25  ;;  %427 = vrot.lane.b32.xlu1 %v838_v12, %s1013_s8  ;;  %s1021_s25 = smov 110  }
  0x4a   : > { %432 = vrot.lane.b32.xlu0 %v838_v12, %s1014_s16  ;;  %436 = vrot.lane.b32.xlu1 %v838_v12, %s1015_s17 }
  0x4e   : > { %442 = vrot.lane.b32.xlu0 %v839_v13, %s1013_s8  ;;  %308 = vrot.lane.b32.xlu1 %v824_v6, %s1005_s28 }
  0x52   : > { %312 = vrot.lane.b32.xlu0 %v824_v6, %s1006_s29  ;;  %321 = vrot.lane.b32.xlu1 %v1137_v14, %s1004_s27 }
  0x56   : > { %325 = vrot.lane.b32.xlu0 %v1137_v14, %s1005_s28  ;;  %473 = vrot.lane.b32.xlu1 %v843_v15, %s1016_s18 }
  0x5a   : > { %478 = vrot.lane.b32.xlu0 %v843_v15, %s1017_s19  ;;  %482 = vrot.lane.b32.xlu1 %v843_v15, %s1018_s20 }
  0x5e   : > { %488 = vrot.lane.b32.xlu0 %v844_v16, %s1016_s18  ;;  %354 = vrot.lane.b32.xlu1 %v829_v8, %s1008_s3 }
  0x62   : > { %358 = vrot.lane.b32.xlu0 %v829_v8, %s1009_s4  ;;  %367 = vrot.lane.b32.xlu1 %v832_v17, %s1007_s30 }
  0x66   : > { %371 = vrot.lane.b32.xlu0 %v832_v17, %s1008_s3  ;;  %519 = vrot.lane.b32.xlu1 %v848_v18, %s1019_s22 }
  0x6a   : > { %524 = vrot.lane.b32.xlu0 %v848_v18, %s1020_s23  ;;  %528 = vrot.lane.b32.xlu1 %v848_v18, %s1021_s25 }
  0x6e   : > { %534 = vrot.lane.b32.xlu0 %v849_v19, %s1019_s22  ;;  %400 = vrot.lane.b32.xlu1 %v834_v10, %s1011_s6 }
  0x72   : > { %404 = vrot.lane.b32.xlu0 %v834_v10, %s1012_s7  ;;  %413 = vrot.lane.b32.xlu1 %v837_v21, %s1010_s5 }
  0x76   : > { %417 = vrot.lane.b32.xlu0 %v837_v21, %s1011_s6  ;;  %446 = vrot.lane.b32.xlu1 %v839_v13, %s1014_s16 }
  0x7a   : > { %450 = vrot.lane.b32.xlu0 %v839_v13, %s1015_s17  ;;  %459 = vrot.lane.b32.xlu1 %v842_v22, %s1013_s8 }
  0x7e   : > { %463 = vrot.lane.b32.xlu0 %v842_v22, %s1014_s16  ;;  %237 = vrot.lane.b32.xlu1 %v1088_v3, %s1001_s24 }
  0x82   : > { %492 = vrot.lane.b32.xlu0 %v844_v16, %s1017_s19  ;;  %496 = vrot.lane.b32.xlu1 %v844_v16, %s1018_s20 }
  0x86   : > { %505 = vrot.lane.b32.xlu0 %v847_v23, %s1016_s18  ;;  %509 = vrot.lane.b32.xlu1 %v847_v23, %s1017_s19 }
  0x88   : > { %v206_v24 = vpop.permute.xlu0 %205  ;;  %v244_v25 = vpop.permute.xlu1 %243 }
  0x89   : > { %208 = vst.msk [vmem:[#allocation2 + $0x4] sm:$0xf] %vm202_vm0, %v206_v24 }
  0x8a   : > { %247 = vst.msk [vmem:[#allocation2] sm:$0xf] %vm246_vm1, %v244_v25  ;;  %283 = vrot.lane.b32.xlu0 %v1122_v11, %s1003_s26  ;;  %538 = vrot.lane.b32.xlu1 %v849_v19, %s1020_s23  ;;  %s808_s26 = sshll.u32 %s1303_s10, 1 }
  0x8b   : > { %s195_s27 = sadd.s32 %s808_s26, %s1305_s9 }
  0x8c   : > { %v210_v27 = vpop.permute.xlu0 %209  ;;  %v249_v28 = vpop.permute.xlu1 %248  ;;  %s809_s28 = sshll.u32 %s195_s27, 3 }
  0x8d   : > { %212 = vst.msk [vmem:[#allocation2 + $0x8] sm:$0xf] %vm202_vm0, %v210_v27  ;;  %s197_s3 = scalar_lea.vmem %s1291_s2, %s809_s28 }
  0x8e   : > { %251 = vst.msk [vmem:[#allocation2 + $0x4] sm:$0xf] %vm246_vm1, %v249_v28  ;;  %542 = vrot.lane.b32.xlu0 %v849_v19, %s1021_s25  ;;  %551 = vrot.lane.b32.xlu1 %v852_v26, %s1019_s22 }
  0x90   : > { %v253_v29 = vpop.permute.xlu0 %252  ;;  %v259_v30 = vpop.permute.xlu1 %258 }
  0x91   : > { %255 = vst.msk [vmem:[#allocation2 + $0x8] sm:$0xf] %vm246_vm1, %v253_v29  ;;  %261 = vst.msk [vmem:[#allocation2 + $0xc] sm:$0xf] %vm246_vm1, %v259_v30 }
  0x92   : > { %555 = vrot.lane.b32.xlu0 %v852_v26, %s1020_s23  ;;  %329 = vrot.lane.b32.xlu1 %v1137_v14, %s1006_s29 }
  0x94   : > { %v290_v31 = vpop.permute.xlu0 %289  ;;  %v295_v32 = vpop.permute.xlu1 %294 }
  0x95   : > { %293 = vst.msk [vmem:[#allocation2] sm:$0xf] %vm292_vm2, %v290_v31  ;;  %297 = vst.msk [vmem:[#allocation2 + $0x4] sm:$0xf] %vm292_vm2, %v295_v32 }
  0x96   : > { %375 = vrot.lane.b32.xlu0 %v832_v17, %s1009_s4  ;;  %421 = vrot.lane.b32.xlu1 %v837_v21, %s1012_s7 }
  0x98   : > { %v299_v33 = vpop.permute.xlu0 %298  ;;  %v305_v34 = vpop.permute.xlu1 %304 }
  0x99   : > { %301 = vst.msk [vmem:[#allocation2 + $0x8] sm:$0xf] %vm292_vm2, %v299_v33  ;;  %307 = vst.msk [vmem:[#allocation2 + $0xc] sm:$0xf] %vm292_vm2, %v305_v34 }
  0x9a   : > { %467 = vrot.lane.b32.xlu0 %v842_v22, %s1015_s17  ;;  %513 = vrot.lane.b32.xlu1 %v847_v23, %s1018_s20 }
  0x9c   : > { %v336_v36 = vpop.permute.xlu0 %335  ;;  %v341_v37 = vpop.permute.xlu1 %340 }
  0x9d   : > { %339 = vst.msk [vmem:[#allocation2] sm:$0xf] %vm338_vm4, %v336_v36  ;;  %343 = vst.msk [vmem:[#allocation2 + $0x4] sm:$0xf] %vm338_vm4, %v341_v37 }
  0x9e   : > { %559 = vrot.lane.b32.xlu0 %v852_v26, %s1021_s25 }
  0xa0   : > { %v345_v38 = vpop.permute.xlu0 %344  ;;  %v351_v39 = vpop.permute.xlu1 %350 }
  0xa1   : > { %347 = vst.msk [vmem:[#allocation2 + $0x8] sm:$0xf] %vm338_vm4, %v345_v38  ;;  %353 = vst.msk [vmem:[#allocation2 + $0xc] sm:$0xf] %vm338_vm4, %v351_v39  ;;  %v563_v38 = vld [vmem:[%s1290_s1] sm:$0xff] }
  0xa4   : > { %v220_v40 = vpop.permute.xlu0 %219  ;;  %v224_v41 = vpop.permute.xlu1 %223 }
  0xa5   : > { %222 = vst.msk [vmem:[#allocation2 + $0x10] sm:$0xf] %vm202_vm0, %v220_v40  ;;  %226 = vst.msk [vmem:[#allocation2 + $0x14] sm:$0xf] %vm202_vm0, %v224_v41 }
  0xa8   : > { %v234_v42 = vpop.permute.xlu0 %233  ;;  %v382_v43 = vpop.permute.xlu1 %381 }
  0xa9   : > { %236 = vst.msk [vmem:[#allocation2 + $0x1c] sm:$0xf] %vm202_vm0, %v234_v42 }
  0xaa   : > { %385 = vst.msk [vmem:[#allocation2] sm:$0xf] %vm384_vm5, %v382_v43 }
  0xac   : > { %v387_v44 = vpop.permute.xlu0 %386  ;;  %v391_v45 = vpop.permute.xlu1 %390 }
  0xad   : > { %389 = vst.msk [vmem:[#allocation2 + $0x4] sm:$0xf] %vm384_vm5, %v387_v44  ;;  %393 = vst.msk [vmem:[#allocation2 + $0x8] sm:$0xf] %vm384_vm5, %v391_v45 }
  0xb0   : > { %v397_v46 = vpop.permute.xlu0 %396  ;;  %v263_v47 = vpop.permute.xlu1 %262 }
  0xb1   : > { %399 = vst.msk [vmem:[#allocation2 + $0xc] sm:$0xf] %vm384_vm5, %v397_v46 }
  0xb2   : > { %265 = vst.msk [vmem:[#allocation2 + $0x10] sm:$0xf] %vm246_vm1, %v263_v47 }
  0xb4   : > { %v267_v48 = vpop.permute.xlu0 %266  ;;  %v276_v49 = vpop.permute.xlu1 %275 }
  0xb5   : > { %269 = vst.msk [vmem:[#allocation2 + $0x14] sm:$0xf] %vm246_vm1, %v267_v48  ;;  %278 = vst.msk [vmem:[#allocation2 + $0x18] sm:$0xf] %vm246_vm1, %v276_v49 }
  0xb8   : > { %v280_v50 = vpop.permute.xlu0 %279  ;;  %v428_v51 = vpop.permute.xlu1 %427 }
  0xb9   : > { %282 = vst.msk [vmem:[#allocation2 + $0x1c] sm:$0xf] %vm246_vm1, %v280_v50 }
  0xba   : > { %431 = vst.msk [vmem:[#allocation2] sm:$0xf] %vm430_vm6, %v428_v51 }
  0xbc   : > { %v433_v52 = vpop.permute.xlu0 %432  ;;  %v437_v53 = vpop.permute.xlu1 %436 }
  0xbd   : > { %435 = vst.msk [vmem:[#allocation2 + $0x4] sm:$0xf] %vm430_vm6, %v433_v52  ;;  %439 = vst.msk [vmem:[#allocation2 + $0x8] sm:$0xf] %vm430_vm6, %v437_v53 }
  0xc0   : > { %v443_v54 = vpop.permute.xlu0 %442  ;;  %v309_v55 = vpop.permute.xlu1 %308 }
  0xc1   : > { %445 = vst.msk [vmem:[#allocation2 + $0xc] sm:$0xf] %vm430_vm6, %v443_v54 }
  0xc2   : > { %311 = vst.msk [vmem:[#allocation2 + $0x10] sm:$0xf] %vm292_vm2, %v309_v55 }
  0xc4   : > { %v313_v56 = vpop.permute.xlu0 %312  ;;  %v322_v57 = vpop.permute.xlu1 %321 }
  0xc5   : > { %315 = vst.msk [vmem:[#allocation2 + $0x14] sm:$0xf] %vm292_vm2, %v313_v56  ;;  %324 = vst.msk [vmem:[#allocation2 + $0x18] sm:$0xf] %vm292_vm2, %v322_v57 }
  0xc8   : > { %v326_v58 = vpop.permute.xlu0 %325  ;;  %v474_v59 = vpop.permute.xlu1 %473 }
  0xc9   : > { %328 = vst.msk [vmem:[#allocation2 + $0x1c] sm:$0xf] %vm292_vm2, %v326_v58 }
  0xca   : > { %477 = vst.msk [vmem:[#allocation2] sm:$0xf] %vm476_vm7, %v474_v59 }
  0xcc   : > { %v479_v60 = vpop.permute.xlu0 %478  ;;  %v483_v61 = vpop.permute.xlu1 %482 }
  0xcd   : > { %481 = vst.msk [vmem:[#allocation2 + $0x4] sm:$0xf] %vm476_vm7, %v479_v60  ;;  %485 = vst.msk [vmem:[#allocation2 + $0x8] sm:$0xf] %vm476_vm7, %v483_v61 }
  0xd0   : > { %v489_v62 = vpop.permute.xlu0 %488  ;;  %v355_v63 = vpop.permute.xlu1 %354 }
  0xd1   : > { %491 = vst.msk [vmem:[#allocation2 + $0xc] sm:$0xf] %vm476_vm7, %v489_v62 }
  0xd2   : > { %357 = vst.msk [vmem:[#allocation2 + $0x10] sm:$0xf] %vm338_vm4, %v355_v63 }
  0xd4   : > { %v359_v0 = vpop.permute.xlu0 %358  ;;  %v368_v1 = vpop.permute.xlu1 %367 }
  0xd5   : > { %361 = vst.msk [vmem:[#allocation2 + $0x14] sm:$0xf] %vm338_vm4, %v359_v0  ;;  %370 = vst.msk [vmem:[#allocation2 + $0x18] sm:$0xf] %vm338_vm4, %v368_v1 }
  0xd8   : > { %v372_v2 = vpop.permute.xlu0 %371  ;;  %v520_v3 = vpop.permute.xlu1 %519 }
  0xd9   : > { %374 = vst.msk [vmem:[#allocation2 + $0x1c] sm:$0xf] %vm338_vm4, %v372_v2 }
  0xda   : > { %523 = vst.msk [vmem:[#allocation2] sm:$0xf] %vm522_vm8, %v520_v3 }
  0xdc   : > { %v525_v4 = vpop.permute.xlu0 %524  ;;  %v529_v5 = vpop.permute.xlu1 %528 }
  0xdd   : > { %527 = vst.msk [vmem:[#allocation2 + $0x4] sm:$0xf] %vm522_vm8, %v525_v4  ;;  %531 = vst.msk [vmem:[#allocation2 + $0x8] sm:$0xf] %vm522_vm8, %v529_v5 }
  0xe0   : > { %v535_v6 = vpop.permute.xlu0 %534  ;;  %v401_v7 = vpop.permute.xlu1 %400 }
  0xe1   : > { %537 = vst.msk [vmem:[#allocation2 + $0xc] sm:$0xf] %vm522_vm8, %v535_v6 }
  0xe2   : > { %403 = vst.msk [vmem:[#allocation2 + $0x10] sm:$0xf] %vm384_vm5, %v401_v7 }
  0xe4   : > { %v405_v8 = vpop.permute.xlu0 %404  ;;  %v414_v9 = vpop.permute.xlu1 %413  ;;  %v564_v12 = vld [vmem:[#allocation2] sm:$0xff] }
  0xe5   : > { %407 = vst.msk [vmem:[#allocation2 + $0x14] sm:$0xf] %vm384_vm5, %v405_v8  ;;  %416 = vst.msk [vmem:[#allocation2 + $0x18] sm:$0xf] %vm384_vm5, %v414_v9 }
  0xe8   : > { %v418_v10 = vpop.permute.xlu0 %417  ;;  %v447_v11 = vpop.permute.xlu1 %446  ;;  %v565_v13 = vld [vmem:[#allocation2 + $0x8] sm:$0xff] }
  0xe9   : > { %420 = vst.msk [vmem:[#allocation2 + $0x1c] sm:$0xf] %vm384_vm5, %v418_v10  ;;  %v887_v14 = vpack.c.bf16 %v565_v13, %v564_v12 }
  0xea   : > { %449 = vst.msk [vmem:[#allocation2 + $0x10] sm:$0xf] %vm430_vm6, %v447_v11 }
  0xeb   : > { %888 = vmatpush3.bf16.msra.mxu0 %v887_v14 }
  0xec   : > { %v451_v15 = vpop.permute.xlu0 %450  ;;  %v460_v16 = vpop.permute.xlu1 %459  ;;  %889 = vmatprep.subr.bf16.mxu0 %v1022_v20 }
  0xed   : > { %453 = vst.msk [vmem:[#allocation2 + $0x14] sm:$0xf] %vm430_vm6, %v451_v15  ;;  %462 = vst.msk [vmem:[#allocation2 + $0x18] sm:$0xf] %vm430_vm6, %v460_v16 }
  0xf0   : > { %v464_v17 = vpop.permute.xlu0 %463  ;;  %v238_v18 = vpop.permute.xlu1 %237 }
  0xf1   : > { %466 = vst.msk [vmem:[#allocation2 + $0x1c] sm:$0xf] %vm430_vm6, %v464_v17 }
  0xf2   : > { %240 = vst.msk [vmem:[#allocation2 + $0x20] sm:$0xf] %vm202_vm0, %v238_v18 }
  0xf4   : > { %v493_v19 = vpop.permute.xlu0 %492  ;;  %v497_v21 = vpop.permute.xlu1 %496 }
  0xf5   : > { %495 = vst.msk [vmem:[#allocation2 + $0x10] sm:$0xf] %vm476_vm7, %v493_v19  ;;  %499 = vst.msk [vmem:[#allocation2 + $0x14] sm:$0xf] %vm476_vm7, %v497_v21 }
  0xf8   : > { %v506_v22 = vpop.permute.xlu0 %505  ;;  %v510_v23 = vpop.permute.xlu1 %509 }
  0xf9   : > { %508 = vst.msk [vmem:[#allocation2 + $0x18] sm:$0xf] %vm476_vm7, %v506_v22  ;;  %512 = vst.msk [vmem:[#allocation2 + $0x1c] sm:$0xf] %vm476_vm7, %v510_v23 }
  0xfc   : > { %v284_v20 = vpop.permute.xlu0 %283  ;;  %v539_v24 = vpop.permute.xlu1 %538 }
  0xfd   : > { %286 = vst.msk [vmem:[#allocation2 + $0x20] sm:$0xf] %vm246_vm1, %v284_v20 }
  0xfe   : > { %541 = vst.msk [vmem:[#allocation2 + $0x10] sm:$0xf] %vm522_vm8, %v539_v24 }
 0x100   : > { %v543_v25 = vpop.permute.xlu0 %542  ;;  %v552_v26 = vpop.permute.xlu1 %551 }
 0x101   : > { %545 = vst.msk [vmem:[#allocation2 + $0x14] sm:$0xf] %vm522_vm8, %v543_v25  ;;  %554 = vst.msk [vmem:[#allocation2 + $0x18] sm:$0xf] %vm522_vm8, %v552_v26 }
 0x104   : > { %v556_v27 = vpop.permute.xlu0 %555  ;;  %v330_v28 = vpop.permute.xlu1 %329 }
 0x105   : > { %558 = vst.msk [vmem:[#allocation2 + $0x1c] sm:$0xf] %vm522_vm8, %v556_v27 }
 0x106   : > { %332 = vst.msk [vmem:[#allocation2 + $0x20] sm:$0xf] %vm292_vm2, %v330_v28 }
 0x108   : > { %v376_v29 = vpop.permute.xlu0 %375  ;;  %v422_v30 = vpop.permute.xlu1 %421  ;;  %v566_v33 = vld [vmem:[#allocation2 + $0x10] sm:$0xff] }
 0x109   : > { %378 = vst.msk [vmem:[#allocation2 + $0x20] sm:$0xf] %vm338_vm4, %v376_v29 }
 0x10a   : > { %424 = vst.msk [vmem:[#allocation2 + $0x20] sm:$0xf] %vm384_vm5, %v422_v30 }
 0x10c   : > { %v468_v31 = vpop.permute.xlu0 %467  ;;  %v514_v32 = vpop.permute.xlu1 %513  ;;  %v567_v34 = vld [vmem:[#allocation2 + $0x18] sm:$0xff] }
 0x10d   : > { %470 = vst.msk [vmem:[#allocation2 + $0x20] sm:$0xf] %vm430_vm6, %v468_v31  ;;  %v890_v36 = vpack.c.bf16 %v567_v34, %v566_v33 }
 0x10e   : > { %516 = vst.msk [vmem:[#allocation2 + $0x20] sm:$0xf] %vm476_vm7, %v514_v32 }
 0x10f   : > { %891 = vmatpush3.bf16.msra.mxu0 %v890_v36 }
 0x110   : > { %v560_v37 = vpop.permute.xlu0 %559  ;;  %881 = vmatprep.subr.mxu0 %v1024_v35 }
 0x111   : > { %562 = vst.msk [vmem:[#allocation2 + $0x20] sm:$0xf] %vm522_vm8, %v560_v37 }
 0x118   : > { %v568_v39 = vld [vmem:[#allocation2 + $0x20] sm:$0xf] }
 0x119   : > { %882 = vmatpush3.msk.msra.mxu0 %vm573_vm9, %v568_v39 }
 0x11a   : > { %884 = vmatmul.mubr.msk.f32.vlgmr.msra.gmra.mrb[0].mxu0 %vm569_vm10, %v563_v38 }
 0x1ed   : > { %v643_v35 = vpop.f32.mrb[0].mxu0 }
 0x1ee   : > { %647 = vst [vmem:[%s197_s3] sm:$0xff] %v643_v35  ;;  %v885_v40 = vpop.f32.mrb[1].mxu0 }
 0x1ef PF: > { %s12_s13 = sadd.s32 1, %s997_s13   ;;  %s1292_s9 = smov %s989_s11 }
 0x1f0   : > { %p9_p7 = scmp.ge.s32.totalorder %s12_s13, 6   ;;  %s1293_s10 = smov %s993_s12 }
 0x1f1   : > { %s1294_s11 = smov %s1297_s14  ;;  %s1295_s12 = smov %s1301_s15 }
 0x1f2   :  { %11 = sbr.rel (!%p9_p7) target bundleno = 3 (0x3), region = 71 }

</bundles_post_ra>
